<compile_context>
chip_gen: v6e
topology: v6e:2x2x1
jax: 0.10.0
libtpu: 0.0.40
codegen_flags: <defaults>
</compile_context>

<pallas_src>
import functools

import jax
import jax.numpy as jnp
from jax.experimental import pallas as pl
from jax.experimental.pallas import tpu as pltpu

C = 32      # in_channel == out_channel (required by `x1 + y` / `x1 * x` in the module)
EPS = 1e-5  # BatchNorm2d default eps


# ---------------------------------------------------------------------------
# Pallas kernel
# ---------------------------------------------------------------------------
def _tdc3x3_5_kernel(x_ref, y_ref, mats_ref, tapw_ref, bias_ref,
                     x3_ref, x4_ref, *, H, W):
    M = H * W
    bf16 = jnp.bfloat16
    f32 = jnp.float32

    x = x_ref[0]                       # (C, M) f32
    y = y_ref[0]                       # (C, M) f32
    w1 = mats_ref[0]                   # (C, C)   bf16, 1x1 conv (BN folded)
    w3 = mats_ref[1]                   # (C, C)   bf16
    wr = tapw_ref[0]                   # (C, 9*C) bf16, 3x3 taps stacked along K
    w2 = tapw_ref[1]                   # (C, 9*C) bf16
    b1 = bias_ref[0]                   # (C, 1)   f32, folded BN biases
    br = bias_ref[1]
    b2 = bias_ref[2]
    b3 = bias_ref[3]

    # Boundary-mask iotas: computed ONCE at (1, M), shared by both 3x3 convs.
    lane = jax.lax.broadcasted_iota(jnp.int32, (1, M), 1)
    col = lane % W

    def conv3x3(inp, w_stack, bias, dil):
        """3x3 'same' conv (stride 1, padding == dilation) as ONE K=9*C matmul.

        inp     : (C, M) f32, H*W flattened along lanes
        w_stack : (Cout, 9*C) bf16, column index = (3*ki + kj)*C + cin
        bias    : (Cout, 1) f32 folded BN bias
        """
        # 4 base masks per conv, all (1, M); AND-combined per tap.
        row_neg = lane >= dil * W          # source row r - dil >= 0  (di = -1)
        row_pos = lane < (H - dil) * W     # source row r + dil <  H  (di = +1)
        col_neg = col >= dil               # source col c - dil >= 0  (dj = -1)
        col_pos = col < (W - dil)          # source col c + dil <  W  (dj = +1)
        row_m = {-1: row_neg, 0: None, 1: row_pos}
        col_m = {-1: col_neg, 0: None, 1: col_pos}

        taps = []
        for ki in range(3):
            for kj in range(3):
                di, dj = ki - 1, kj - 1
                s = (di * W + dj) * dil                   # flat source offset
                t = inp if s == 0 else pltpu.roll(inp, shift=(-s) % M, axis=1)
                m = row_m[di]
                if col_m[dj] is not None:
                    m = col_m[dj] if m is None else (m & col_m[dj])
                if m is not None:
                    t = jnp.where(m, t, 0.0)              # (1,M) mask broadcast
                taps.append(t.astype(bf16))
        stacked = jnp.concatenate(taps, axis=0)           # (9*C, M) bf16
        return jnp.dot(w_stack, stacked, preferred_element_type=f32) + bias

    # conv1: 1x1 conv + folded eval-mode BN (BasicConv2d.forward applies no ReLU).
    x1 = jnp.dot(w1, x.astype(bf16), preferred_element_type=f32) + b1

    # Resudiual branch: sigmoid(BasicConv2d 3x3 pad=1 (y)) * y
    r = conv3x3(y, wr, br, dil=1)
    y_res = jax.nn.sigmoid(r) * y

    # conv2: 3x3, dilation=4, padding=4 on (x1 + residual(y))
    x2 = conv3x3(x1 + y_res, w2, b2, dil=4)

    x3 = x1 + x2
    x4 = jnp.dot(w3, x3.astype(bf16), preferred_element_type=f32) + b3

    x3_ref[0] = x3.astype(x3_ref.dtype)
    x4_ref[0] = x4.astype(x4_ref.dtype)


# ---------------------------------------------------------------------------
# Host-side wrapper
# ---------------------------------------------------------------------------
def _fold_bn(w, gamma, beta, mean, var):
    """Fold eval-mode BatchNorm into a bias-free conv: y = conv(x)*s + (beta - s*mean)."""
    scale = gamma / jnp.sqrt(var + EPS)
    w_eff = (w * scale[:, None, None, None]).astype(jnp.float32)
    b_eff = (beta - scale * mean).astype(jnp.float32)
    return w_eff, b_eff


def _stack_taps(w_eff):
    # (Cout, Cin, 3, 3) -> (Cout, 9*Cin); column index = (3*ki + kj)*Cin + cin,
    # matching the tap-concatenation order used inside the kernel.
    co, ci = w_eff.shape[:2]
    return jnp.transpose(w_eff, (0, 2, 3, 1)).reshape(co, 9 * ci)


def tdc3x3_5_forward(x_nchw, y_nchw, p, out_dtype=jnp.float32):
    n, c, h, w = x_nchw.shape
    m = h * w

    # Free reshape (no transpose): NCHW -> (N, C, H*W), lane-dense last dim.
    x2d = x_nchw.reshape(n, c, m).astype(jnp.float32)
    y2d = y_nchw.reshape(n, c, m).astype(jnp.float32)

    w1, b1 = _fold_bn(p["conv1_w"], p["bn1_gamma"], p["bn1_beta"], p["bn1_mean"], p["bn1_var"])
    wr, br = _fold_bn(p["convr_w"], p["bnr_gamma"], p["bnr_beta"], p["bnr_mean"], p["bnr_var"])
    w2, b2 = _fold_bn(p["conv2_w"], p["bn2_gamma"], p["bn2_beta"], p["bn2_mean"], p["bn2_var"])
    w3, b3 = _fold_bn(p["conv3_w"], p["bn3_gamma"], p["bn3_beta"], p["bn3_mean"], p["bn3_var"])

    # Pack the 10 tiny parameter tensors into 3 arrays (fewer DMA descriptors).
    mats = jnp.stack([w1.reshape(c, c), w3.reshape(c, c)]).astype(jnp.bfloat16)    # (2, C, C)
    tapw = jnp.stack([_stack_taps(wr), _stack_taps(w2)]).astype(jnp.bfloat16)      # (2, C, 9C)
    bias = jnp.stack([b1, br, b2, b3]).reshape(4, c, 1).astype(jnp.float32)        # (4, C, 1)

    kernel = functools.partial(_tdc3x3_5_kernel, H=h, W=w)

    img_spec = pl.BlockSpec((1, c, m), lambda i: (i, 0, 0))
    mats_spec = pl.BlockSpec((2, c, c), lambda i: (0, 0, 0))
    tapw_spec = pl.BlockSpec((2, c, 9 * c), lambda i: (0, 0, 0))
    bias_spec = pl.BlockSpec((4, c, 1), lambda i: (0, 0, 0))

    x3, x4 = pl.pallas_call(
        kernel,
        out_shape=(jax.ShapeDtypeStruct((n, c, m), out_dtype),
                   jax.ShapeDtypeStruct((n, c, m), out_dtype)),
        grid_spec=pltpu.PrefetchScalarGridSpec(
            num_scalar_prefetch=0,
            grid=(n,),
            in_specs=[img_spec, img_spec, mats_spec, tapw_spec, bias_spec],
            out_specs=[img_spec, img_spec],
        ),
        compiler_params=pltpu.CompilerParams(
            dimension_semantics=("parallel",)),
    )(x2d, y2d, mats, tapw, bias)

    return x3.reshape(n, c, h, w), x4.reshape(n, c, h, w)


# ---------------------------------------------------------------------------
# Pure-JAX reference (for correctness check)
# ---------------------------------------------------------------------------
def _basic_conv2d_ref(x, w, gamma, beta, mean, var, *, padding=0, dilation=1):
    y = jax.lax.conv_general_dilated(
        x, w, window_strides=(1, 1),
        padding=((padding, padding), (padding, padding)),
        rhs_dilation=(dilation, dilation),
        dimension_numbers=("NCHW", "OIHW", "NCHW"))
    scale = gamma / jnp.sqrt(var + EPS)
    return y * scale[None, :, None, None] + (beta - scale * mean)[None, :, None, None]


def tdc3x3_5_reference(x, y, p):
    x1 = _basic_conv2d_ref(x, p["conv1_w"], p["bn1_gamma"], p["bn1_beta"], p["bn1_mean"], p["bn1_var"])
    r = _basic_conv2d_ref(y, p["convr_w"], p["bnr_gamma"], p["bnr_beta"], p["bnr_mean"], p["bnr_var"],
                          padding=1)
    y_res = jax.nn.sigmoid(r) * y
    x2 = _basic_conv2d_ref(x1 + y_res, p["conv2_w"], p["bn2_gamma"], p["bn2_beta"], p["bn2_mean"], p["bn2_var"],
                           padding=4, dilation=4)
    x3 = x1 + x2
    x4 = _basic_conv2d_ref(x3, p["conv3_w"], p["bn3_gamma"], p["bn3_beta"], p["bn3_mean"], p["bn3_var"])
    return x3, x4


# ---------------------------------------------------------------------------
# Demo / self-test
# ---------------------------------------------------------------------------
if __name__ == "__main__":
    key = jax.random.PRNGKey(0)
    keys = jax.random.split(key, 10)
    N, H, W = 2, 16, 16

    x = jax.random.normal(keys[0], (N, C, H, W), jnp.float32)
    y = jax.random.normal(keys[1], (N, C, H, W), jnp.float32)

    def bn_params(k):
        k1, k2, k3, k4 = jax.random.split(k, 4)
        return (1.0 + 0.1 * jax.random.normal(k1, (C,), jnp.float32),          # gamma
                0.1 * jax.random.normal(k2, (C,), jnp.float32),                 # beta
                0.1 * jax.random.normal(k3, (C,), jnp.float32),                 # running_mean
                0.5 + jax.random.uniform(k4, (C,), jnp.float32))                # running_var

    params = {
        "conv1_w": 0.1 * jax.random.normal(keys[2], (C, C, 1, 1), jnp.float32),
        "convr_w": 0.1 * jax.random.normal(keys[3], (C, C, 3, 3), jnp.float32),
        "conv2_w": 0.1 * jax.random.normal(keys[4], (C, C, 3, 3), jnp.float32),
        "conv3_w": 0.1 * jax.random.normal(keys[5], (C, C, 1, 1), jnp.float32),
    }
    for name, k in (("bn1", keys[6]), ("bnr", keys[7]), ("bn2", keys[8]), ("bn3", keys[9])):
        g, b, m, v = bn_params(k)
        params[f"{name}_gamma"] = g
        params[f"{name}_beta"] = b
        params[f"{name}_mean"] = m
        params[f"{name}_var"] = v

    fwd = jax.jit(tdc3x3_5_forward)
    x3, x4 = fwd(x, y, params)
    jax.block_until_ready((x3, x4))

    assert x3.shape == (N, C, H, W), x3.shape
    assert x4.shape == (N, C, H, W), x4.shape

    # Correctness check against a pure-JAX/XLA f32 reference (tolerance absorbs
    # the bf16 MXU-operand quantisation).
    x3_ref, x4_ref = jax.jit(tdc3x3_5_reference)(x, y, params)
    jax.block_until_ready((x3_ref, x4_ref))
    assert bool(jnp.allclose(x3, x3_ref, atol=5e-2, rtol=5e-2)), \
        float(jnp.max(jnp.abs(x3 - x3_ref)))
    assert bool(jnp.allclose(x4, x4_ref, atol=5e-2, rtol=5e-2)), \
        float(jnp.max(jnp.abs(x4 - x4_ref)))

    print("KERNEL_OK")
</pallas_src>

<mosaic_0001>
module attributes {stable_mosaic.version = 11 : i64} {
  func.func @_tdc3x3_5_kernel(%arg0: i32, %arg1: memref<1x32x256xf32, #tpu.memory_space<vmem>>, %arg2: memref<1x32x256xf32, #tpu.memory_space<vmem>>, %arg3: memref<2x32x32xbf16, #tpu.memory_space<vmem>>, %arg4: memref<2x32x288xbf16, #tpu.memory_space<vmem>>, %arg5: memref<4x32x1xf32, #tpu.memory_space<vmem>>, %arg6: memref<1x32x256xf32, #tpu.memory_space<vmem>>, %arg7: memref<1x32x256xf32, #tpu.memory_space<vmem>>) attributes {dimension_semantics = [#tpu.dimension_semantics<parallel>], iteration_bounds = array<i64: 2>, scalar_prefetch = 0 : i64, scratch_operands = 0 : i64, tpu.core_type = #tpu.core_type<tc>, window_params = [{transform_indices = @transform_0, window_bounds = array<i64: 1, 32, 256>}, {transform_indices = @transform_1, window_bounds = array<i64: 1, 32, 256>}, {pipeline_mode = #tpu.pipeline_mode<synchronous>, transform_indices = @transform_2, window_bounds = array<i64: 2, 32, 32>}, {pipeline_mode = #tpu.pipeline_mode<synchronous>, transform_indices = @transform_3, window_bounds = array<i64: 2, 32, 288>}, {pipeline_mode = #tpu.pipeline_mode<synchronous>, transform_indices = @transform_4, window_bounds = array<i64: 4, 32, 1>}, {transform_indices = @transform_5, window_bounds = array<i64: 1, 32, 256>}, {transform_indices = @transform_6, window_bounds = array<i64: 1, 32, 256>}]} {
    %c0 = arith.constant 0 : index
    %c0_0 = arith.constant 0 : index
    %c0_1 = arith.constant 0 : index
    %0 = vector.load %arg1[%c0, %c0_0, %c0_1] : memref<1x32x256xf32, #tpu.memory_space<vmem>>, vector<1x32x256xf32>
    %1 = vector.shape_cast %0 : vector<1x32x256xf32> to vector<32x256xf32>
    %c0_2 = arith.constant 0 : index
    %c0_3 = arith.constant 0 : index
    %c0_4 = arith.constant 0 : index
    %2 = vector.load %arg2[%c0_2, %c0_3, %c0_4] : memref<1x32x256xf32, #tpu.memory_space<vmem>>, vector<1x32x256xf32>
    %3 = vector.shape_cast %2 : vector<1x32x256xf32> to vector<32x256xf32>
    %c0_5 = arith.constant 0 : index
    %c0_6 = arith.constant 0 : index
    %c0_7 = arith.constant 0 : index
    %4 = vector.load %arg3[%c0_5, %c0_6, %c0_7] : memref<2x32x32xbf16, #tpu.memory_space<vmem>>, vector<1x32x32xbf16>
    %5 = vector.shape_cast %4 : vector<1x32x32xbf16> to vector<32x32xbf16>
    %c1 = arith.constant 1 : index
    %c0_8 = arith.constant 0 : index
    %c0_9 = arith.constant 0 : index
    %6 = vector.load %arg3[%c1, %c0_8, %c0_9] : memref<2x32x32xbf16, #tpu.memory_space<vmem>>, vector<1x32x32xbf16>
    %7 = vector.shape_cast %6 : vector<1x32x32xbf16> to vector<32x32xbf16>
    %c0_10 = arith.constant 0 : index
    %c0_11 = arith.constant 0 : index
    %c0_12 = arith.constant 0 : index
    %8 = vector.load %arg4[%c0_10, %c0_11, %c0_12] : memref<2x32x288xbf16, #tpu.memory_space<vmem>>, vector<1x32x288xbf16>
    %9 = vector.shape_cast %8 : vector<1x32x288xbf16> to vector<32x288xbf16>
    %c1_13 = arith.constant 1 : index
    %c0_14 = arith.constant 0 : index
    %c0_15 = arith.constant 0 : index
    %10 = vector.load %arg4[%c1_13, %c0_14, %c0_15] : memref<2x32x288xbf16, #tpu.memory_space<vmem>>, vector<1x32x288xbf16>
    %11 = vector.shape_cast %10 : vector<1x32x288xbf16> to vector<32x288xbf16>
    %c0_16 = arith.constant 0 : index
    %c0_17 = arith.constant 0 : index
    %c0_18 = arith.constant 0 : index
    %12 = vector.load %arg5[%c0_16, %c0_17, %c0_18] : memref<4x32x1xf32, #tpu.memory_space<vmem>>, vector<1x32x1xf32>
    %13 = vector.shape_cast %12 : vector<1x32x1xf32> to vector<32x1xf32>
    %c1_19 = arith.constant 1 : index
    %c0_20 = arith.constant 0 : index
    %c0_21 = arith.constant 0 : index
    %14 = vector.load %arg5[%c1_19, %c0_20, %c0_21] : memref<4x32x1xf32, #tpu.memory_space<vmem>>, vector<1x32x1xf32>
    %15 = vector.shape_cast %14 : vector<1x32x1xf32> to vector<32x1xf32>
    %c2 = arith.constant 2 : index
    %c0_22 = arith.constant 0 : index
    %c0_23 = arith.constant 0 : index
    %16 = vector.load %arg5[%c2, %c0_22, %c0_23] : memref<4x32x1xf32, #tpu.memory_space<vmem>>, vector<1x32x1xf32>
    %17 = vector.shape_cast %16 : vector<1x32x1xf32> to vector<32x1xf32>
    %c3 = arith.constant 3 : index
    %c0_24 = arith.constant 0 : index
    %c0_25 = arith.constant 0 : index
    %18 = vector.load %arg5[%c3, %c0_24, %c0_25] : memref<4x32x1xf32, #tpu.memory_space<vmem>>, vector<1x32x1xf32>
    %19 = vector.shape_cast %18 : vector<1x32x1xf32> to vector<32x1xf32>
    %20 = tpu.iota {dimensions = array<i32: 1>} : vector<1x256xi32>
    %c16_i32 = arith.constant 16 : i32
    %c0_i32 = arith.constant 0 : i32
    %21 = arith.cmpi eq, %c16_i32, %c0_i32 : i32
    %c1_i32 = arith.constant 1 : i32
    %22 = arith.select %21, %c1_i32, %c16_i32 : i32
    %23 = vector.broadcast %22 : i32 to vector<1x256xi32>
    %24 = arith.remsi %20, %23 : vector<1x256xi32>
    %c0_i32_26 = arith.constant 0 : i32
    %25 = vector.broadcast %c0_i32_26 : i32 to vector<1x256xi32>
    %26 = arith.cmpi ne, %24, %25 : vector<1x256xi32>
    %c0_i32_27 = arith.constant 0 : i32
    %27 = vector.broadcast %c0_i32_27 : i32 to vector<1x256xi32>
    %28 = arith.cmpi slt, %24, %27 : vector<1x256xi32>
    %c0_i32_28 = arith.constant 0 : i32
    %29 = arith.cmpi slt, %22, %c0_i32_28 : i32
    %30 = vector.broadcast %29 : i1 to vector<1x256xi1>
    %31 = vector.broadcast %30 : vector<1x256xi1> to vector<1x256xi1>
    %32 = arith.xori %28, %31 : vector<1x256xi1>
    %33 = arith.andi %32, %26 : vector<1x256xi1>
    %34 = vector.broadcast %22 : i32 to vector<1x256xi32>
    %35 = arith.addi %24, %34 : vector<1x256xi32>
    %36 = arith.select %33, %35, %24 : vector<1x256xi1>, vector<1x256xi32>
    %37 = arith.truncf %1 : vector<32x256xf32> to vector<32x256xbf16>
    %cst = arith.constant dense<0.000000e+00> : vector<32x256xf32>
    %38 = tpu.matmul %5, %37, %cst {dimension_numbers = #tpu.dot_dimension_numbers<[1], [0], [0], [1], [0, 0, 1, 1], [], []>} : vector<32x32xbf16>, vector<32x256xbf16>, vector<32x256xf32> -> vector<32x256xf32>
    %39 = vector.broadcast %13 : vector<32x1xf32> to vector<32x256xf32>
    %40 = arith.addf %38, %39 : vector<32x256xf32>
    %c16_i32_29 = arith.constant 16 : i32
    %41 = vector.broadcast %c16_i32_29 : i32 to vector<1x256xi32>
    %42 = arith.cmpi sge, %20, %41 : vector<1x256xi32>
    %c240_i32 = arith.constant 240 : i32
    %43 = vector.broadcast %c240_i32 : i32 to vector<1x256xi32>
    %44 = arith.cmpi slt, %20, %43 : vector<1x256xi32>
    %c1_i32_30 = arith.constant 1 : i32
    %45 = vector.broadcast %c1_i32_30 : i32 to vector<1x256xi32>
    %46 = arith.cmpi sge, %36, %45 : vector<1x256xi32>
    %c15_i32 = arith.constant 15 : i32
    %47 = vector.broadcast %c15_i32 : i32 to vector<1x256xi32>
    %48 = arith.cmpi slt, %36, %47 : vector<1x256xi32>
    %c17_i32 = arith.constant 17 : i32
    %49 = tpu.dynamic_rotate %3 by %c17_i32 dim 1 : vector<32x256xf32>, i32 -> vector<32x256xf32>
    %50 = arith.andi %42, %46 : vector<1x256xi1>
    %cst_31 = arith.constant 0.000000e+00 : f32
    %51 = vector.shape_cast %50 : vector<1x256xi1> to vector<1x256xi1>
    %52 = vector.broadcast %51 : vector<1x256xi1> to vector<32x256xi1>
    %53 = vector.broadcast %cst_31 : f32 to vector<32x256xf32>
    %54 = arith.select %52, %49, %53 : vector<32x256xi1>, vector<32x256xf32>
    %55 = arith.truncf %54 : vector<32x256xf32> to vector<32x256xbf16>
    %c16_i32_32 = arith.constant 16 : i32
    %56 = tpu.dynamic_rotate %3 by %c16_i32_32 dim 1 : vector<32x256xf32>, i32 -> vector<32x256xf32>
    %cst_33 = arith.constant 0.000000e+00 : f32
    %57 = vector.shape_cast %42 : vector<1x256xi1> to vector<1x256xi1>
    %58 = vector.broadcast %57 : vector<1x256xi1> to vector<32x256xi1>
    %59 = vector.broadcast %cst_33 : f32 to vector<32x256xf32>
    %60 = arith.select %58, %56, %59 : vector<32x256xi1>, vector<32x256xf32>
    %61 = arith.truncf %60 : vector<32x256xf32> to vector<32x256xbf16>
    %c15_i32_34 = arith.constant 15 : i32
    %62 = tpu.dynamic_rotate %3 by %c15_i32_34 dim 1 : vector<32x256xf32>, i32 -> vector<32x256xf32>
    %63 = arith.andi %42, %48 : vector<1x256xi1>
    %cst_35 = arith.constant 0.000000e+00 : f32
    %64 = vector.shape_cast %63 : vector<1x256xi1> to vector<1x256xi1>
    %65 = vector.broadcast %64 : vector<1x256xi1> to vector<32x256xi1>
    %66 = vector.broadcast %cst_35 : f32 to vector<32x256xf32>
    %67 = arith.select %65, %62, %66 : vector<32x256xi1>, vector<32x256xf32>
    %68 = arith.truncf %67 : vector<32x256xf32> to vector<32x256xbf16>
    %c1_i32_36 = arith.constant 1 : i32
    %69 = tpu.dynamic_rotate %3 by %c1_i32_36 dim 1 : vector<32x256xf32>, i32 -> vector<32x256xf32>
    %cst_37 = arith.constant 0.000000e+00 : f32
    %70 = vector.shape_cast %46 : vector<1x256xi1> to vector<1x256xi1>
    %71 = vector.broadcast %70 : vector<1x256xi1> to vector<32x256xi1>
    %72 = vector.broadcast %cst_37 : f32 to vector<32x256xf32>
    %73 = arith.select %71, %69, %72 : vector<32x256xi1>, vector<32x256xf32>
    %74 = arith.truncf %73 : vector<32x256xf32> to vector<32x256xbf16>
    %75 = arith.truncf %3 : vector<32x256xf32> to vector<32x256xbf16>
    %c255_i32 = arith.constant 255 : i32
    %76 = tpu.dynamic_rotate %3 by %c255_i32 dim 1 : vector<32x256xf32>, i32 -> vector<32x256xf32>
    %cst_38 = arith.constant 0.000000e+00 : f32
    %77 = vector.shape_cast %48 : vector<1x256xi1> to vector<1x256xi1>
    %78 = vector.broadcast %77 : vector<1x256xi1> to vector<32x256xi1>
    %79 = vector.broadcast %cst_38 : f32 to vector<32x256xf32>
    %80 = arith.select %78, %76, %79 : vector<32x256xi1>, vector<32x256xf32>
    %81 = arith.truncf %80 : vector<32x256xf32> to vector<32x256xbf16>
    %c241_i32 = arith.constant 241 : i32
    %82 = tpu.dynamic_rotate %3 by %c241_i32 dim 1 : vector<32x256xf32>, i32 -> vector<32x256xf32>
    %83 = arith.andi %44, %46 : vector<1x256xi1>
    %cst_39 = arith.constant 0.000000e+00 : f32
    %84 = vector.shape_cast %83 : vector<1x256xi1> to vector<1x256xi1>
    %85 = vector.broadcast %84 : vector<1x256xi1> to vector<32x256xi1>
    %86 = vector.broadcast %cst_39 : f32 to vector<32x256xf32>
    %87 = arith.select %85, %82, %86 : vector<32x256xi1>, vector<32x256xf32>
    %88 = arith.truncf %87 : vector<32x256xf32> to vector<32x256xbf16>
    %c240_i32_40 = arith.constant 240 : i32
    %89 = tpu.dynamic_rotate %3 by %c240_i32_40 dim 1 : vector<32x256xf32>, i32 -> vector<32x256xf32>
    %cst_41 = arith.constant 0.000000e+00 : f32
    %90 = vector.shape_cast %44 : vector<1x256xi1> to vector<1x256xi1>
    %91 = vector.broadcast %90 : vector<1x256xi1> to vector<32x256xi1>
    %92 = vector.broadcast %cst_41 : f32 to vector<32x256xf32>
    %93 = arith.select %91, %89, %92 : vector<32x256xi1>, vector<32x256xf32>
    %94 = arith.truncf %93 : vector<32x256xf32> to vector<32x256xbf16>
    %c239_i32 = arith.constant 239 : i32
    %95 = tpu.dynamic_rotate %3 by %c239_i32 dim 1 : vector<32x256xf32>, i32 -> vector<32x256xf32>
    %96 = arith.andi %44, %48 : vector<1x256xi1>
    %cst_42 = arith.constant 0.000000e+00 : f32
    %97 = vector.shape_cast %96 : vector<1x256xi1> to vector<1x256xi1>
    %98 = vector.broadcast %97 : vector<1x256xi1> to vector<32x256xi1>
    %99 = vector.broadcast %cst_42 : f32 to vector<32x256xf32>
    %100 = arith.select %98, %95, %99 : vector<32x256xi1>, vector<32x256xf32>
    %101 = arith.truncf %100 : vector<32x256xf32> to vector<32x256xbf16>
    %102 = tpu.concatenate %55, %61, %68, %74, %75, %81, %88, %94, %101 in 0 : vector<32x256xbf16>, vector<32x256xbf16>, vector<32x256xbf16>, vector<32x256xbf16>, vector<32x256xbf16>, vector<32x256xbf16>, vector<32x256xbf16>, vector<32x256xbf16>, vector<32x256xbf16> -> vector<288x256xbf16>
    %cst_43 = arith.constant dense<0.000000e+00> : vector<32x256xf32>
    %103 = tpu.matmul %9, %102, %cst_43 {dimension_numbers = #tpu.dot_dimension_numbers<[1], [0], [0], [1], [0, 0, 1, 1], [], []>} : vector<32x288xbf16>, vector<288x256xbf16>, vector<32x256xf32> -> vector<32x256xf32>
    %104 = vector.broadcast %15 : vector<32x1xf32> to vector<32x256xf32>
    %105 = arith.addf %103, %104 : vector<32x256xf32>
    %106 = arith.negf %105 : vector<32x256xf32>
    %107 = math.exp %106 : vector<32x256xf32>
    %cst_44 = arith.constant 1.000000e+00 : f32
    %108 = vector.broadcast %cst_44 : f32 to vector<32x256xf32>
    %109 = arith.addf %108, %107 : vector<32x256xf32>
    %110 = arith.divf %108, %109 : vector<32x256xf32>
    %111 = arith.mulf %110, %3 : vector<32x256xf32>
    %112 = arith.addf %40, %111 : vector<32x256xf32>
    %c64_i32 = arith.constant 64 : i32
    %113 = vector.broadcast %c64_i32 : i32 to vector<1x256xi32>
    %114 = arith.cmpi sge, %20, %113 : vector<1x256xi32>
    %c192_i32 = arith.constant 192 : i32
    %115 = vector.broadcast %c192_i32 : i32 to vector<1x256xi32>
    %116 = arith.cmpi slt, %20, %115 : vector<1x256xi32>
    %c4_i32 = arith.constant 4 : i32
    %117 = vector.broadcast %c4_i32 : i32 to vector<1x256xi32>
    %118 = arith.cmpi sge, %36, %117 : vector<1x256xi32>
    %c12_i32 = arith.constant 12 : i32
    %119 = vector.broadcast %c12_i32 : i32 to vector<1x256xi32>
    %120 = arith.cmpi slt, %36, %119 : vector<1x256xi32>
    %c68_i32 = arith.constant 68 : i32
    %121 = tpu.dynamic_rotate %112 by %c68_i32 dim 1 : vector<32x256xf32>, i32 -> vector<32x256xf32>
    %122 = arith.andi %114, %118 : vector<1x256xi1>
    %cst_45 = arith.constant 0.000000e+00 : f32
    %123 = vector.shape_cast %122 : vector<1x256xi1> to vector<1x256xi1>
    %124 = vector.broadcast %123 : vector<1x256xi1> to vector<32x256xi1>
    %125 = vector.broadcast %cst_45 : f32 to vector<32x256xf32>
    %126 = arith.select %124, %121, %125 : vector<32x256xi1>, vector<32x256xf32>
    %127 = arith.truncf %126 : vector<32x256xf32> to vector<32x256xbf16>
    %c64_i32_46 = arith.constant 64 : i32
    %128 = tpu.dynamic_rotate %112 by %c64_i32_46 dim 1 : vector<32x256xf32>, i32 -> vector<32x256xf32>
    %cst_47 = arith.constant 0.000000e+00 : f32
    %129 = vector.shape_cast %114 : vector<1x256xi1> to vector<1x256xi1>
    %130 = vector.broadcast %129 : vector<1x256xi1> to vector<32x256xi1>
    %131 = vector.broadcast %cst_47 : f32 to vector<32x256xf32>
    %132 = arith.select %130, %128, %131 : vector<32x256xi1>, vector<32x256xf32>
    %133 = arith.truncf %132 : vector<32x256xf32> to vector<32x256xbf16>
    %c60_i32 = arith.constant 60 : i32
    %134 = tpu.dynamic_rotate %112 by %c60_i32 dim 1 : vector<32x256xf32>, i32 -> vector<32x256xf32>
    %135 = arith.andi %114, %120 : vector<1x256xi1>
    %cst_48 = arith.constant 0.000000e+00 : f32
    %136 = vector.shape_cast %135 : vector<1x256xi1> to vector<1x256xi1>
    %137 = vector.broadcast %136 : vector<1x256xi1> to vector<32x256xi1>
    %138 = vector.broadcast %cst_48 : f32 to vector<32x256xf32>
    %139 = arith.select %137, %134, %138 : vector<32x256xi1>, vector<32x256xf32>
    %140 = arith.truncf %139 : vector<32x256xf32> to vector<32x256xbf16>
    %c4_i32_49 = arith.constant 4 : i32
    %141 = tpu.dynamic_rotate %112 by %c4_i32_49 dim 1 : vector<32x256xf32>, i32 -> vector<32x256xf32>
    %cst_50 = arith.constant 0.000000e+00 : f32
    %142 = vector.shape_cast %118 : vector<1x256xi1> to vector<1x256xi1>
    %143 = vector.broadcast %142 : vector<1x256xi1> to vector<32x256xi1>
    %144 = vector.broadcast %cst_50 : f32 to vector<32x256xf32>
    %145 = arith.select %143, %141, %144 : vector<32x256xi1>, vector<32x256xf32>
    %146 = arith.truncf %145 : vector<32x256xf32> to vector<32x256xbf16>
    %147 = arith.truncf %112 : vector<32x256xf32> to vector<32x256xbf16>
    %c252_i32 = arith.constant 252 : i32
    %148 = tpu.dynamic_rotate %112 by %c252_i32 dim 1 : vector<32x256xf32>, i32 -> vector<32x256xf32>
    %cst_51 = arith.constant 0.000000e+00 : f32
    %149 = vector.shape_cast %120 : vector<1x256xi1> to vector<1x256xi1>
    %150 = vector.broadcast %149 : vector<1x256xi1> to vector<32x256xi1>
    %151 = vector.broadcast %cst_51 : f32 to vector<32x256xf32>
    %152 = arith.select %150, %148, %151 : vector<32x256xi1>, vector<32x256xf32>
    %153 = arith.truncf %152 : vector<32x256xf32> to vector<32x256xbf16>
    %c196_i32 = arith.constant 196 : i32
    %154 = tpu.dynamic_rotate %112 by %c196_i32 dim 1 : vector<32x256xf32>, i32 -> vector<32x256xf32>
    %155 = arith.andi %116, %118 : vector<1x256xi1>
    %cst_52 = arith.constant 0.000000e+00 : f32
    %156 = vector.shape_cast %155 : vector<1x256xi1> to vector<1x256xi1>
    %157 = vector.broadcast %156 : vector<1x256xi1> to vector<32x256xi1>
    %158 = vector.broadcast %cst_52 : f32 to vector<32x256xf32>
    %159 = arith.select %157, %154, %158 : vector<32x256xi1>, vector<32x256xf32>
    %160 = arith.truncf %159 : vector<32x256xf32> to vector<32x256xbf16>
    %c192_i32_53 = arith.constant 192 : i32
    %161 = tpu.dynamic_rotate %112 by %c192_i32_53 dim 1 : vector<32x256xf32>, i32 -> vector<32x256xf32>
    %cst_54 = arith.constant 0.000000e+00 : f32
    %162 = vector.shape_cast %116 : vector<1x256xi1> to vector<1x256xi1>
    %163 = vector.broadcast %162 : vector<1x256xi1> to vector<32x256xi1>
    %164 = vector.broadcast %cst_54 : f32 to vector<32x256xf32>
    %165 = arith.select %163, %161, %164 : vector<32x256xi1>, vector<32x256xf32>
    %166 = arith.truncf %165 : vector<32x256xf32> to vector<32x256xbf16>
    %c188_i32 = arith.constant 188 : i32
    %167 = tpu.dynamic_rotate %112 by %c188_i32 dim 1 : vector<32x256xf32>, i32 -> vector<32x256xf32>
    %168 = arith.andi %116, %120 : vector<1x256xi1>
    %cst_55 = arith.constant 0.000000e+00 : f32
    %169 = vector.shape_cast %168 : vector<1x256xi1> to vector<1x256xi1>
    %170 = vector.broadcast %169 : vector<1x256xi1> to vector<32x256xi1>
    %171 = vector.broadcast %cst_55 : f32 to vector<32x256xf32>
    %172 = arith.select %170, %167, %171 : vector<32x256xi1>, vector<32x256xf32>
    %173 = arith.truncf %172 : vector<32x256xf32> to vector<32x256xbf16>
    %174 = tpu.concatenate %127, %133, %140, %146, %147, %153, %160, %166, %173 in 0 : vector<32x256xbf16>, vector<32x256xbf16>, vector<32x256xbf16>, vector<32x256xbf16>, vector<32x256xbf16>, vector<32x256xbf16>, vector<32x256xbf16>, vector<32x256xbf16>, vector<32x256xbf16> -> vector<288x256xbf16>
    %cst_56 = arith.constant dense<0.000000e+00> : vector<32x256xf32>
    %175 = tpu.matmul %11, %174, %cst_56 {dimension_numbers = #tpu.dot_dimension_numbers<[1], [0], [0], [1], [0, 0, 1, 1], [], []>} : vector<32x288xbf16>, vector<288x256xbf16>, vector<32x256xf32> -> vector<32x256xf32>
    %176 = vector.broadcast %17 : vector<32x1xf32> to vector<32x256xf32>
    %177 = arith.addf %175, %176 : vector<32x256xf32>
    %178 = arith.addf %40, %177 : vector<32x256xf32>
    %179 = arith.truncf %178 : vector<32x256xf32> to vector<32x256xbf16>
    %cst_57 = arith.constant dense<0.000000e+00> : vector<32x256xf32>
    %180 = tpu.matmul %7, %179, %cst_57 {dimension_numbers = #tpu.dot_dimension_numbers<[1], [0], [0], [1], [0, 0, 1, 1], [], []>} : vector<32x32xbf16>, vector<32x256xbf16>, vector<32x256xf32> -> vector<32x256xf32>
    %181 = vector.broadcast %19 : vector<32x1xf32> to vector<32x256xf32>
    %182 = arith.addf %180, %181 : vector<32x256xf32>
    %c0_58 = arith.constant 0 : index
    %c0_59 = arith.constant 0 : index
    %c0_60 = arith.constant 0 : index
    %183 = vector.load %arg6[%c0_58, %c0_59, %c0_60] : memref<1x32x256xf32, #tpu.memory_space<vmem>>, vector<1x32x256xf32>
    %184 = vector.shape_cast %183 : vector<1x32x256xf32> to vector<32x256xf32>
    %185 = vector.shape_cast %178 : vector<32x256xf32> to vector<1x32x256xf32>
    tpu.vector_store %arg6[%c0_58, %c0_59, %c0_60], %185 {strides = array<i32>} : memref<1x32x256xf32, #tpu.memory_space<vmem>>, vector<1x32x256xf32>,
    %c0_61 = arith.constant 0 : index
    %c0_62 = arith.constant 0 : index
    %c0_63 = arith.constant 0 : index
    %186 = vector.load %arg7[%c0_61, %c0_62, %c0_63] : memref<1x32x256xf32, #tpu.memory_space<vmem>>, vector<1x32x256xf32>
    %187 = vector.shape_cast %186 : vector<1x32x256xf32> to vector<32x256xf32>
    %188 = vector.shape_cast %182 : vector<32x256xf32> to vector<1x32x256xf32>
    tpu.vector_store %arg7[%c0_61, %c0_62, %c0_63], %188 {strides = array<i32>} : memref<1x32x256xf32, #tpu.memory_space<vmem>>, vector<1x32x256xf32>,
    return
  }
  func.func @transform_0(%arg0: i32) -> (i32, i32, i32) {
    %c0_i32 = arith.constant 0 : i32
    %c0_i32_0 = arith.constant 0 : i32
    %c0_i32_1 = arith.constant 0 : i32
    return %arg0, %c0_i32, %c0_i32_0 : i32, i32, i32
  }
  func.func @transform_1(%arg0: i32) -> (i32, i32, i32) {
    %c0_i32 = arith.constant 0 : i32
    %c0_i32_0 = arith.constant 0 : i32
    %c0_i32_1 = arith.constant 0 : i32
    return %arg0, %c0_i32, %c0_i32_0 : i32, i32, i32
  }
  func.func @transform_2(%arg0: i32) -> (i32, i32, i32) {
    %c0_i32 = arith.constant 0 : i32
    %c0_i32_0 = arith.constant 0 : i32
    %c0_i32_1 = arith.constant 0 : i32
    %c0_i32_2 = arith.constant 0 : i32
    return %c0_i32, %c0_i32_0, %c0_i32_1 : i32, i32, i32
  }
  func.func @transform_3(%arg0: i32) -> (i32, i32, i32) {
    %c0_i32 = arith.constant 0 : i32
    %c0_i32_0 = arith.constant 0 : i32
    %c0_i32_1 = arith.constant 0 : i32
    %c0_i32_2 = arith.constant 0 : i32
    return %c0_i32, %c0_i32_0, %c0_i32_1 : i32, i32, i32
  }
  func.func @transform_4(%arg0: i32) -> (i32, i32, i32) {
    %c0_i32 = arith.constant 0 : i32
    %c0_i32_0 = arith.constant 0 : i32
    %c0_i32_1 = arith.constant 0 : i32
    %c0_i32_2 = arith.constant 0 : i32
    return %c0_i32, %c0_i32_0, %c0_i32_1 : i32, i32, i32
  }
  func.func @transform_5(%arg0: i32) -> (i32, i32, i32) {
    %c0_i32 = arith.constant 0 : i32
    %c0_i32_0 = arith.constant 0 : i32
    %c0_i32_1 = arith.constant 0 : i32
    return %arg0, %c0_i32, %c0_i32_0 : i32, i32, i32
  }
  func.func @transform_6(%arg0: i32) -> (i32, i32, i32) {
    %c0_i32 = arith.constant 0 : i32
    %c0_i32_0 = arith.constant 0 : i32
    %c0_i32_1 = arith.constant 0 : i32
    return %arg0, %c0_i32, %c0_i32_0 : i32, i32, i32
  }
}

</mosaic_0001>

<bundles_post_ra>
// kernel: tdc3x3_5_forward.1
= control target key start
LH: loop header
LB: loop body
LE: loop exit
PB: predicated region body
PF: predicated region fallthrough
CT: control target
= control target key end

     0   :  { %s2334_s21 = smov 0   ;;  %s3225_s0 = inlined_call_operand.vmem [shape: f32[2,32,256], index: 0, kind: input, shape index: {}]   ;;  %s3226_s1 = inlined_call_operand.vmem [shape: f32[2,32,256], index: 1, kind: input, shape index: {}]   ;;  %s3227_s2 = inlined_call_operand.vmem [shape: bf16[2,32,32], index: 2, kind: input, shape index: {}]   ;;  %s3228_s3 = inlined_call_operand.vmem [shape: bf16[2,32,288], index: 3, kind: input, shape index: {}]   ;;  %s3229_s4 = inlined_call_operand.vmem [shape: f32[4,32,1], index: 4, kind: input, shape index: {}]   ;;  %s3230_s5 = inlined_call_operand.vmem [shape: f32[2,32,256], index: 5, kind: output, shape index: {0}]   ;;  %s3231_s6 = inlined_call_operand.vmem [shape: f32[2,32,256], index: 6, kind: output, shape index: {1}]  }
   0x1 LB: > { %s1694_s22 = sadd.s32 4294967295, %s2283_s21   ;;  %p1698_p0 = scmp.ge.s32.totalorder %s2283_s21, 1  ;;  %s2283_s21 = sphi %s2334_s21, %s17_s21  }
   0x2   : > { %p225_p1 = scmp.lt.s32.totalorder %s2283_s21, 3 }
   0x4   : > { %p226_p2 = pnand %p1698_p0, %p225_p1 }
   0x5   : > { %p265_p3 = scmp.lt.s32.totalorder (!%p226_p2), %s1694_s22, 1  ;;  %s2285_s27 = smov (!%p226_p2), 1  }
   0x6   : > { %229 = sbr.rel (%p226_p2) target bundleno = 1072 (0x430), region = 40  ;;  %s2286_s28 = smov (!%p226_p2), 15  }
   0x7   : > { %s2287_s29 = smov (!%p226_p2), 16   ;;  %s2288_s30 = smov (!%p226_p2), 17  }
   0x8   : > { %s2289_s10 = smov (!%p226_p2), 112   ;;  %s2290_s11 = smov (!%p226_p2), 113  }
   0x9   : > { %s2292_s14 = smov (!%p226_p2), 127   ;;  %s2293_s17 = smov (!%p226_p2), 111  }
   0xa   : > { %s2298_s7 = smov (!%p226_p2), 124  }
   0xb   : > { %s3271_s22 = smov (!%p265_p3, %s1694_s22), 1  ;;  %v2221_v24 = vld [vmem:[%s3227_s2] sm:$0xff]   ;;  %v2291_v25 = vmov 0   ;;  %vm408_vm0 = vcmask 261120   ;;  %v2222_v26 = vld [vmem:[%s3227_s2 + $0x8] sm:$0xff]   ;;  %v1721_v28 = vld [vmem:[%s3229_s4 + $0x30] sm:$0xff]  ;;  %v347_v36 = vlaneseq }
   0xc   : > { %s2342_s23 = sshll.u32 %s3271_s22, 6  ;;  %447 = vmatprep.mubr.bf16.mxu0 %v2291_v25  ;;  %2120 = vset.pattern.permute.xlu1 %v2291_v25  ;;  %v2226_v27 = vld [vmem:[%s3228_s3 + $0x4] ss:$12 sps:$4 sm:$0xff]   ;;  %v1722_v29 = vld [vmem:[%s3229_s4 + $0x38] sm:$0xff]  ;;  %v1720_v30 = vld [vmem:[%s3229_s4 + $0x28] sm:$0xff] }
   0xd   : > { %s2348_s26 = scalar_lea.vmem %s3226_s1, %s2342_s23  ;;  %s269_s9 = scalar_lea.vmem %s3225_s0, %s2342_s23  ;;  %2119 = vset.pattern.permute.xlu0 %v2291_v25  ;;  %904 = vmatprep.mubr.bf16.mxu1 %v2226_v27  ;;  %v1719_v31 = vld [vmem:[%s3229_s4 + $0x20] sm:$0xff]  ;;  %v331_v32 = vld [vmem:[%s3229_s4 + $0x18] sm:$0xff]  ;;  %v330_v33 = vld [vmem:[%s3229_s4 + $0x10] sm:$0xff]  ;;  %v2466_v37 = vand.u32 127, %v347_v36 }
   0xe   : > { %v2351_v0 = vld [vmem:[%s2348_s26 + $0x20] sm:$0xff]  ;;  %v2354_v1 = vld [vmem:[%s2348_s26 + $0x30] sm:$0xff]  ;;  %v2367_v5 = vld [vmem:[%s2348_s26 + $0x28] sm:$0xff]  ;;  %s3191_s16 = scalar_lea.vmem %s3230_s5, %s2342_s23  ;;  %s284_s25 = scalar_lea.vmem %s3231_s6, %s2342_s23 }
   0xf   : > { %v2357_v2 = vld [vmem:[%s2348_s26] sm:$0xff]  ;;  %v2361_v3 = vpack.i.bf16 %v2354_v1, %v2351_v0  ;;  %v2364_v4 = vld [vmem:[%s2348_s26 + $0x10] sm:$0xff]  ;;  %v2370_v6 = vld [vmem:[%s2348_s26 + $0x38] sm:$0xff]  ;;  %v2469_v38 = vadd.s32 128, %v2466_v37  ;;  %v2475_v42 = vand.u32 15, %v2466_v37  ;;  %vm619_vm1 = vcmp.lt.s32.totalorder %v2466_v37, 1 }
  0x10   : > { %v2374_v7 = vpack.i.bf16 %v2364_v4, %v2357_v2  ;;  %v2377_v8 = vld [vmem:[%s2348_s26 + $0x8] sm:$0xff]  ;;  %v2380_v9 = vld [vmem:[%s2348_s26 + $0x18] sm:$0xff]  ;;  %v2385_v10 = vpack.i.bf16 %v2370_v6, %v2367_v5  ;;  %v290_v15 = vld [vmem:[%s269_s9 + $0x20] sm:$0xff]  ;;  %vm576_vm4 = vcmp.lt.s32.totalorder %v2466_v37, 15  ;;  %vm468_vm8 = vcmp.ge.s32.totalorder %v2466_v37, 16 }
  0x11   : > { %1960 = vrot.lane.b32.xlu0 %v2361_v3, %s2285_s27  ;;  %v2390_v11 = vpack.i.bf16 %v2380_v9, %v2377_v8  ;;  %v291_v12 = vld [vmem:[%s269_s9 + $0x28] sm:$0xff]  ;;  %v293_v13 = vld [vmem:[%s269_s9 + $0x38] sm:$0xff]  ;;  %v292_v16 = vld [vmem:[%s269_s9 + $0x30] sm:$0xff]  ;;  %v2472_v41 = vand.u32 15, %v2469_v38  ;;  %vm472_vm3 = vcmp.ge.s32.totalorder %v2475_v42, 1  ;;  %vm474_vm9 = vcmp.lt.s32.totalorder %v2475_v42, 15 }
  0x12   : > { %1970 = vrot.lane.b32.xlu1 %v2374_v7, %s2285_s27  ;;  %v377_v14 = vpack.c.bf16 %v293_v13, %v291_v12  ;;  %v376_v17 = vpack.c.bf16 %v292_v16, %v290_v15  ;;  %v287_v18 = vld [vmem:[%s269_s9 + $0x8] sm:$0xff]  ;;  %v289_v19 = vld [vmem:[%s269_s9 + $0x18] sm:$0xff]  ;;  %v286_v21 = vld [vmem:[%s269_s9] sm:$0xff]  ;;  %vm535_vm12 = vcmp.lt.s32.totalorder %v2466_v37, 16  ;;  %vm492_vm14 = vcmp.lt.s32.totalorder %v2466_v37, 17 }
  0x13   : > { %v375_v20 = vpack.c.bf16 %v289_v19, %v287_v18  ;;  %v288_v22 = vld [vmem:[%s269_s9 + $0x10] sm:$0xff]  ;;  %v329_v34 = vld [vmem:[%s3229_s4 + $0x8] sm:$0xff]  ;;  %v328_v35 = vld [vmem:[%s3229_s4] sm:$0xff]  ;;  %vm473_vm2 = vcmp.ge.s32.totalorder %v2472_v41, 1  ;;  %vm475_vm7 = vcmp.lt.s32.totalorder %v2472_v41, 15 }
  0x14   : > { %427 = vmatprep.subr.bf16.mxu0 %v377_v14  ;;  %v374_v23 = vpack.c.bf16 %v288_v22, %v286_v21  ;;  %vm2496_vm5 = vmpackc.low %vm473_vm2, %vm473_vm2 }
  0x15   : > { %1965 = vrot.lane.b32.xlu0 %v2385_v10, %s2285_s27  ;;  %428 = vmatpush1.bf16.msra.mxu0 %v376_v17  ;;  %vm2503_vm6 = vmpackc.low %vm472_vm3, %vm472_vm3 }
  0x16   : > { %1975 = vrot.lane.b32.xlu1 %v2390_v11, %s2285_s27  ;;  %429 = vmatprep.subr.bf16.mxu0 %v375_v20  ;;  %vm2531_vm10 = vmpackc.low %vm475_vm7, %vm475_vm7 }
  0x17   : > { %vm2539_vm11 = vmand %vm468_vm8, %vm474_vm9 }
  0x18   : > { %vm1756_vm13 = vmpackc.low %vm2539_vm11, %vm2539_vm11 }
  0x19   : > { %1980 = vrot.lane.b32.xlu0 %v2361_v3, %s2286_s28  ;;  %430 = vmatpush1.bf16.msra.mxu0 %v374_v23  ;;  %vm2591_vm15 = vmpackc.low %vm468_vm8, %vm468_vm8 }
  0x1a   : > { %1985 = vrot.lane.b32.xlu1 %v2385_v10, %s2286_s28 }
  0x1c   : > { %1733 = vmatmul.mubr.msk.bf16.vlgmr.msra.gmra.mxu0 %vm408_vm0, %v2221_v24 }
  0x1d   : > { %1990 = vrot.lane.b32.xlu0 %v2374_v7, %s2286_s28  ;;  %457 = vmatprep.mubr.bf16.mxu0 %v2291_v25 }
  0x1e   : > { %1995 = vrot.lane.b32.xlu1 %v2390_v11, %s2286_s28  ;;  %s2295_s28 = smov 60  }
  0x21   : > { %2000 = vrot.lane.b32.xlu0 %v2361_v3, %s2287_s29 }
  0x22   : > { %2005 = vrot.lane.b32.xlu1 %v2385_v10, %s2287_s29 }
  0x24   : > { %1734 = vmatmul.mubr.msk.bf16.gmra.mxu0 %vm408_vm0, %v2222_v26 }
  0x25   : > { %2010 = vrot.lane.b32.xlu0 %v2374_v7, %s2287_s29  ;;  %957 = vmatprep.mubr.bf16.mxu0 %v2291_v25 }
  0x26   : > { %2015 = vrot.lane.b32.xlu1 %v2390_v11, %s2287_s29  ;;  %s2296_s29 = smov 64  }
  0x29   : > { %2020 = vrot.lane.b32.xlu0 %v2361_v3, %s2288_s30 }
  0x2a   : > { %2025 = vrot.lane.b32.xlu1 %v2385_v10, %s2288_s30 }
  0x2d   : > { %2030 = vrot.lane.b32.xlu0 %v2374_v7, %s2288_s30 }
  0x2e   : > { %2035 = vrot.lane.b32.xlu1 %v2390_v11, %s2288_s30  ;;  %s2297_s30 = smov 68  }
  0x31   : > { %2040 = vrot.lane.b32.xlu0 %v2361_v3, %s2289_s10 }
  0x32   : > { %2045 = vrot.lane.b32.xlu1 %v2385_v10, %s2289_s10 }
  0x35   : > { %2050 = vrot.lane.b32.xlu0 %v2374_v7, %s2289_s10 }
  0x36   : > { %2055 = vrot.lane.b32.xlu1 %v2390_v11, %s2289_s10 }
  0x39   : > { %2060 = vrot.lane.b32.xlu0 %v2361_v3, %s2290_s11 }
  0x3a   : > { %2065 = vrot.lane.b32.xlu1 %v2385_v10, %s2290_s11 }
  0x3d   : > { %2070 = vrot.lane.b32.xlu0 %v2374_v7, %s2290_s11 }
  0x3e   : > { %2075 = vrot.lane.b32.xlu1 %v2390_v11, %s2290_s11 }
  0x41   : > { %2080 = vrot.lane.b32.xlu0 %v2361_v3, %s2292_s14 }
  0x42   : > { %2085 = vrot.lane.b32.xlu1 %v2385_v10, %s2292_s14 }
  0x45   : > { %2090 = vrot.lane.b32.xlu0 %v2374_v7, %s2292_s14 }
  0x46   : > { %2095 = vrot.lane.b32.xlu1 %v2390_v11, %s2292_s14 }
  0x49   : > { %2100 = vrot.lane.b32.xlu0 %v2361_v3, %s2293_s17 }
  0x4a   : > { %2105 = vrot.lane.b32.xlu1 %v2385_v10, %s2293_s17 }
  0x4d   : > { %2110 = vrot.lane.b32.xlu0 %v2374_v7, %s2293_s17 }
  0x4e   : > { %2115 = vrot.lane.b32.xlu1 %v2390_v11, %s2293_s17 }
  0x51   : > { %828 = vperm.xlu0 %2119, %v1721_v28  }
  0x52   : > { %833 = vperm.xlu1 %2120, %v1722_v29  }
  0x55   : > { %823 = vperm.xlu0 %2119, %v1720_v30  }
  0x56   : > { %818 = vperm.xlu1 %2120, %v1719_v31  }
  0x59   : > { %395 = vperm.xlu0 %2119, %v331_v32  }
  0x5a   : > { %390 = vperm.xlu1 %2120, %v330_v33  }
  0x5d   : > { %385 = vperm.xlu0 %2119, %v329_v34  }
  0x5e   : > { %380 = vperm.xlu1 %2120, %v328_v35  }
  0x83   : > { %v1961_v39 = vpop.permute.xlu0 %1960 }
  0x84   : > { %v1971_v40 = vpop.permute.xlu1 %1970  ;;  %v1963_v43 = vunpack.i.h.bf16 %v1961_v39  ;;  %v1962_v44 = vunpack.i.l.bf16 %v1961_v39 }
  0x85   : > { %v1973_v46 = vunpack.i.h.bf16 %v1971_v40  ;;  %v1972_v47 = vunpack.i.l.bf16 %v1971_v40 }
  0x87   : > { %v1966_v45 = vpop.permute.xlu0 %1965 }
  0x88   : > { %v1968_v48 = vunpack.i.h.bf16 %v1966_v45  ;;  %v1967_v49 = vunpack.i.l.bf16 %v1966_v45  ;;  %v1976_v50 = vpop.permute.xlu1 %1975 }
  0x89   : > { %v1978_v51 = vunpack.i.h.bf16 %v1976_v50  ;;  %v1977_v52 = vunpack.i.l.bf16 %v1976_v50 }
  0x8a   : > { %v622_v53 = vsel %vm619_vm1, %v1962_v44, %v1967_v49  ;;  %v623_v54 = vsel %vm619_vm1, %v1963_v43, %v1968_v48  ;;  %v626_v55 = vsel %vm619_vm1, %v1967_v49, %v1962_v44  ;;  %v627_v56 = vsel %vm619_vm1, %v1968_v48, %v1963_v43 }
  0x8b   : > { %v1981_v57 = vpop.permute.xlu0 %1980  ;;  %v620_v58 = vsel %vm619_vm1, %v1972_v47, %v1977_v52  ;;  %v621_v59 = vsel %vm619_vm1, %v1973_v46, %v1978_v51  ;;  %v1742_v10 = vpack.c.bf16 %v623_v54, %v622_v53  ;;  %v1745_v12 = vpack.c.bf16 %v627_v56, %v626_v55 }
  0x8c   : > { %v1983_v60 = vunpack.i.h.bf16 %v1981_v57  ;;  %v1982_v61 = vunpack.i.l.bf16 %v1981_v57  ;;  %v1986_v62 = vpop.permute.xlu1 %1985  ;;  %v624_v13 = vsel %vm619_vm1, %v1977_v52, %v1972_v47  ;;  %v625_v14 = vsel %vm619_vm1, %v1978_v51, %v1973_v46  ;;  %vm2609_vm1 = vmand %vm468_vm8, %vm472_vm3 }
  0x8d   : > { %v1988_v3 = vunpack.i.h.bf16 %v1986_v62  ;;  %v1987_v7 = vunpack.i.l.bf16 %v1986_v62  ;;  %v1748_v15 = vpack.c.bf16 %v621_v59, %v620_v58  ;;  %1743 = vmatprep.subr.msk.bf16.mxu1 %vm2496_vm5, %v1742_v10  ;;  %v1751_v29 = vpack.c.bf16 %v625_v14, %v624_v13  ;;  %vm1774_vm3 = vmpackc.low %vm2609_vm1, %vm2609_vm1 }
  0x8e   : > { %1746 = vmatpush1.bf16.msk.msra.mxu1 %vm2503_vm6, %v1745_v12  ;;  %vm471_vm8 = vcmp.lt.s32.totalorder %v2469_v38, 240  ;;  %vm1046_vm1 = vcmp.ge.s32.totalorder %v2475_v42, 4 }
  0x8f   : > { %v580_v16 = vsel %vm576_vm4, %v1983_v60, %v1988_v3  ;;  %v579_v17 = vsel %vm576_vm4, %v1982_v61, %v1987_v7  ;;  %v1991_v18 = vpop.permute.xlu0 %1990  ;;  %v584_v19 = vsel %vm576_vm4, %v1988_v3, %v1983_v60  ;;  %v583_v23 = vsel %vm576_vm4, %v1987_v7, %v1982_v61  ;;  %1749 = vmatprep.subr.msk.bf16.mxu1 %vm2496_vm5, %v1748_v15  ;;  %vm2648_vm11 = vmpackc.low %vm471_vm8, %vm471_vm8 }
  0x90   : > { %v1993_v20 = vunpack.i.h.bf16 %v1991_v18  ;;  %v1992_v21 = vunpack.i.l.bf16 %v1991_v18  ;;  %v1996_v22 = vpop.permute.xlu1 %1995  ;;  %v1754_v24 = vpack.c.bf16 %v580_v16, %v579_v17  ;;  %v1757_v34 = vpack.c.bf16 %v584_v19, %v583_v23 }
  0x91   : > { %v1998_v26 = vunpack.i.h.bf16 %v1996_v22  ;;  %v1997_v27 = vunpack.i.l.bf16 %v1996_v22 }
  0x92   : > { %1752 = vmatpush1.bf16.msk.msra.mxu1 %vm2503_vm6, %v1751_v29 }
  0x93   : > { %v578_v31 = vsel %vm576_vm4, %v1993_v20, %v1998_v26  ;;  %v577_v32 = vsel %vm576_vm4, %v1992_v21, %v1997_v27  ;;  %v2001_v33 = vpop.permute.xlu0 %2000  ;;  %v582_v35 = vsel %vm576_vm4, %v1998_v26, %v1993_v20  ;;  %v581_v43 = vsel %vm576_vm4, %v1997_v27, %v1992_v21  ;;  %1755 = vmatprep.subr.msk.bf16.mxu1 %vm2531_vm10, %v1754_v24 }
  0x94   : > { %v2003_v36 = vunpack.i.h.bf16 %v2001_v33  ;;  %v2002_v39 = vunpack.i.l.bf16 %v2001_v33  ;;  %v2006_v40 = vpop.permute.xlu1 %2005  ;;  %v1760_v44 = vpack.c.bf16 %v578_v31, %v577_v32  ;;  %v1763_v50 = vpack.c.bf16 %v582_v35, %v581_v43 }
  0x95   : > { %v2008_v45 = vunpack.i.h.bf16 %v2006_v40  ;;  %v2007_v46 = vunpack.i.l.bf16 %v2006_v40  ;;  %vm748_vm4 = vcmp.lt.s32.totalorder %v2466_v37, 112 }
  0x96   : > { %1758 = vmatpush1.bf16.msk.msra.mxu1 %vm1756_vm13, %v1757_v34 }
  0x97   : > { %v2011_v47 = vpop.permute.xlu0 %2010  ;;  %v538_v48 = vsel %vm535_vm12, %v2002_v39, %v2007_v46  ;;  %v539_v49 = vsel %vm535_vm12, %v2003_v36, %v2008_v45  ;;  %v543_v51 = vsel %vm535_vm12, %v2008_v45, %v2003_v36  ;;  %v542_v55 = vsel %vm535_vm12, %v2007_v46, %v2002_v39  ;;  %1761 = vmatprep.subr.msk.bf16.mxu1 %vm2531_vm10, %v1760_v44 }
  0x98   : > { %v2013_v52 = vunpack.i.h.bf16 %v2011_v47  ;;  %v2012_v53 = vunpack.i.l.bf16 %v2011_v47  ;;  %v2016_v54 = vpop.permute.xlu1 %2015  ;;  %v559_v58 = vpack.c.bf16 %v539_v49, %v538_v48  ;;  %v1766_v62 = vpack.c.bf16 %v543_v51, %v542_v55 }
  0x99   : > { %v2018_v56 = vunpack.i.h.bf16 %v2016_v54  ;;  %v2017_v57 = vunpack.i.l.bf16 %v2016_v54 }
  0x9a   : > { %1764 = vmatpush1.bf16.msk.msra.mxu1 %vm1756_vm13, %v1763_v50  ;;  %vm664_vm13 = vcmp.lt.s32.totalorder %v2466_v37, 127 }
  0x9b   : > { %v2021_v59 = vpop.permute.xlu0 %2020  ;;  %v536_v60 = vsel %vm535_vm12, %v2012_v53, %v2017_v57  ;;  %v537_v61 = vsel %vm535_vm12, %v2013_v52, %v2018_v56  ;;  %v541_v3 = vsel %vm535_vm12, %v2018_v56, %v2013_v52  ;;  %v540_v13 = vsel %vm535_vm12, %v2017_v57, %v2012_v53  ;;  %880 = vmatprep.subr.bf16.mxu1 %v559_v58 }
  0x9c   : > { %v2023_v7 = vunpack.i.h.bf16 %v2021_v59  ;;  %v2022_v10 = vunpack.i.l.bf16 %v2021_v59  ;;  %v2026_v12 = vpop.permute.xlu1 %2025  ;;  %v557_v17 = vpack.c.bf16 %v537_v61, %v536_v60  ;;  %v1769_v21 = vpack.c.bf16 %v541_v3, %v540_v13 }
  0x9d   : > { %v2028_v14 = vunpack.i.h.bf16 %v2026_v12  ;;  %v2027_v15 = vunpack.i.l.bf16 %v2026_v12  ;;  %vm705_vm12 = vcmp.lt.s32.totalorder %v2466_v37, 113 }
  0x9e   : > { %1767 = vmatpush1.bf16.msk.msra.mxu1 %vm2591_vm15, %v1766_v62 }
  0x9f   : > { %v496_v18 = vsel %vm492_vm14, %v2023_v7, %v2028_v14  ;;  %v495_v19 = vsel %vm492_vm14, %v2022_v10, %v2027_v15  ;;  %v2031_v20 = vpop.permute.xlu0 %2030  ;;  %v500_v22 = vsel %vm492_vm14, %v2028_v14, %v2023_v7  ;;  %v499_v27 = vsel %vm492_vm14, %v2027_v15, %v2022_v10  ;;  %882 = vmatprep.subr.bf16.mxu1 %v557_v17 }
  0xa0   : > { %v2033_v23 = vunpack.i.h.bf16 %v2031_v20  ;;  %v2032_v24 = vunpack.i.l.bf16 %v2031_v20  ;;  %v2036_v26 = vpop.permute.xlu1 %2035  ;;  %v1772_v29 = vpack.c.bf16 %v496_v18, %v495_v19  ;;  %v1775_v36 = vpack.c.bf16 %v500_v22, %v499_v27 }
  0xa1   : > { %v2038_v30 = vunpack.i.h.bf16 %v2036_v26  ;;  %v2037_v31 = vunpack.i.l.bf16 %v2036_v26 }
  0xa2   : > { %1770 = vmatpush1.bf16.msk.msra.mxu1 %vm2591_vm15, %v1769_v21  ;;  %vm2733_vm15 = vmand %vm471_vm8, %vm475_vm7 }
  0xa3   : > { %v494_v33 = vsel %vm492_vm14, %v2033_v23, %v2038_v30  ;;  %v493_v34 = vsel %vm492_vm14, %v2032_v24, %v2037_v31  ;;  %v2041_v35 = vpop.permute.xlu0 %2040  ;;  %v498_v39 = vsel %vm492_vm14, %v2038_v30, %v2033_v23  ;;  %v497_v45 = vsel %vm492_vm14, %v2037_v31, %v2032_v24  ;;  %1773 = vmatprep.subr.msk.bf16.mxu1 %vm2496_vm5, %v1772_v29  ;;  %vm1813_vm7 = vmpackc.low %vm2733_vm15, %vm2733_vm15 }
  0xa4   : > { %v2043_v40 = vunpack.i.h.bf16 %v2041_v35  ;;  %v2042_v43 = vunpack.i.l.bf16 %v2041_v35  ;;  %v2046_v44 = vpop.permute.xlu1 %2045  ;;  %v1778_v46 = vpack.c.bf16 %v494_v33, %v493_v34  ;;  %v1781_v52 = vpack.c.bf16 %v498_v39, %v497_v45 }
  0xa5   : > { %v2048_v47 = vunpack.i.h.bf16 %v2046_v44  ;;  %v2047_v48 = vunpack.i.l.bf16 %v2046_v44  ;;  %vm789_vm14 = vcmp.lt.s32.totalorder %v2466_v37, 111 }
  0xa6   : > { %1776 = vmatpush1.bf16.msk.msra.mxu1 %vm1774_vm3, %v1775_v36 }
  0xa7   : > { %v756_v49 = vsel %vm748_vm4, %v2048_v47, %v2043_v40  ;;  %v755_v50 = vsel %vm748_vm4, %v2047_v48, %v2042_v43  ;;  %v2051_v51 = vpop.permute.xlu0 %2050  ;;  %v751_v56 = vsel %vm748_vm4, %v2042_v43, %v2047_v48  ;;  %1779 = vmatprep.subr.msk.bf16.mxu1 %vm2496_vm5, %v1778_v46  ;;  %v752_v60 = vsel %vm748_vm4, %v2043_v40, %v2048_v47  ;;  %vm2676_vm5 = vmand %vm471_vm8, %vm473_vm2 }
  0xa8   : > { %v2053_v53 = vunpack.i.h.bf16 %v2051_v51  ;;  %v2052_v54 = vunpack.i.l.bf16 %v2051_v51  ;;  %v2056_v55 = vpop.permute.xlu1 %2055  ;;  %v1784_v57 = vpack.c.bf16 %v756_v49, %v755_v50  ;;  %v771_v13 = vpack.c.bf16 %v752_v60, %v751_v56  ;;  %vm1789_vm2 = vmpackc.low %vm2676_vm5, %vm2676_vm5 }
  0xa9   : > { %v2058_v58 = vunpack.i.h.bf16 %v2056_v55  ;;  %v2057_v59 = vunpack.i.l.bf16 %v2056_v55  ;;  %vm1049_vm8 = vcmp.lt.s32.totalorder %v2472_v41, 12  ;;  %vm1048_vm5 = vcmp.lt.s32.totalorder %v2475_v42, 12  ;;  %v2235_v42 = vld [vmem:[%s3228_s3 + $0x50] ss:$12 sps:$4 sm:$0xff]  }
  0xaa   : > { %1782 = vmatpush1.bf16.msk.msra.mxu1 %vm1774_vm3, %v1781_v52  ;;  %vm2948_vm3 = vmpackc.low %vm1046_vm1, %vm1046_vm1 }
  0xab   : > { %v754_v62 = vsel %vm748_vm4, %v2058_v58, %v2053_v53  ;;  %v753_v3 = vsel %vm748_vm4, %v2057_v59, %v2052_v54  ;;  %v2061_v7 = vpop.permute.xlu0 %2060  ;;  %v749_v14 = vsel %vm748_vm4, %v2052_v54, %v2057_v59  ;;  %1785 = vmatprep.subr.msk.bf16.mxu1 %vm2648_vm11, %v1784_v57  ;;  %v750_v18 = vsel %vm748_vm4, %v2053_v53, %v2058_v58  ;;  %vm2990_vm15 = vmpackc.low %vm1049_vm8, %vm1049_vm8 }
  0xac   : > { %v2063_v63 = vunpack.i.h.bf16 %v2061_v7  ;;  %v2062_v10 = vunpack.i.l.bf16 %v2061_v7  ;;  %v2066_v12 = vpop.permute.xlu1 %2065  ;;  %v1787_v15 = vpack.c.bf16 %v754_v62, %v753_v3  ;;  %v769_v29 = vpack.c.bf16 %v750_v18, %v749_v14 }
  0xad   : > { %v2068_v16 = vunpack.i.h.bf16 %v2066_v12  ;;  %v2067_v17 = vunpack.i.l.bf16 %v2066_v12 }
  0xae   : > { %889 = vmatpush2.bf16.msra.mxu1 %v771_v13 }
  0xaf   : > { %v713_v19 = vsel %vm705_vm12, %v2068_v16, %v2063_v63  ;;  %v712_v20 = vsel %vm705_vm12, %v2067_v17, %v2062_v10  ;;  %v2071_v21 = vpop.permute.xlu0 %2070  ;;  %v709_v23 = vsel %vm705_vm12, %v2063_v63, %v2068_v16  ;;  %v708_v30 = vsel %vm705_vm12, %v2062_v10, %v2067_v17  ;;  %1788 = vmatprep.subr.msk.bf16.mxu1 %vm2648_vm11, %v1787_v15 }
  0xb0   : > { %v2073_v24 = vunpack.i.h.bf16 %v2071_v21  ;;  %v2072_v26 = vunpack.i.l.bf16 %v2071_v21  ;;  %v2076_v27 = vpop.permute.xlu1 %2075  ;;  %v1790_v31 = vpack.c.bf16 %v713_v19, %v712_v20  ;;  %v1793_v39 = vpack.c.bf16 %v709_v23, %v708_v30 }
  0xb1   : > { %v2078_v32 = vunpack.i.h.bf16 %v2076_v27  ;;  %v2077_v33 = vunpack.i.l.bf16 %v2076_v27  ;;  %vm1045_vm11 = vcmp.lt.s32.totalorder %v2469_v38, 192 }
  0xb2   : > { %891 = vmatpush2.bf16.msra.mxu1 %v769_v29 }
  0xb3   : > { %v711_v34 = vsel %vm705_vm12, %v2078_v32, %v2073_v24  ;;  %v710_v35 = vsel %vm705_vm12, %v2077_v33, %v2072_v26  ;;  %v2081_v36 = vpop.permute.xlu0 %2080  ;;  %v707_v40 = vsel %vm705_vm12, %v2073_v24, %v2078_v32  ;;  %v706_v46 = vsel %vm705_vm12, %v2072_v26, %v2077_v33  ;;  %1791 = vmatprep.subr.msk.bf16.mxu1 %vm1789_vm2, %v1790_v31 }
  0xb4   : > { %v2083_v43 = vunpack.i.h.bf16 %v2081_v36  ;;  %v2082_v44 = vunpack.i.l.bf16 %v2081_v36  ;;  %v2086_v45 = vpop.permute.xlu1 %2085  ;;  %v1796_v47 = vpack.c.bf16 %v711_v34, %v710_v35  ;;  %v1799_v53 = vpack.c.bf16 %v707_v40, %v706_v46  ;;  %v2228_v46 = vld [vmem:[%s3228_s3 + $0x1c] ss:$12 sps:$4 sm:$0xff]  }
  0xb5   : > { %v2088_v48 = vunpack.i.h.bf16 %v2086_v45  ;;  %v2087_v49 = vunpack.i.l.bf16 %v2086_v45  ;;  %v647_v35 = vpack.c.bf16 %v2370_v6, %v2367_v5  ;;  %v2223_v45 = vld [vmem:[%s3228_s3 + $0x8] ss:$12 sps:$4 sm:$0xff]   ;;  %vm1042_vm12 = vcmp.ge.s32.totalorder %v2466_v37, 64 }
  0xb6   : > { %1794 = vmatpush2.bf16.msk.msra.mxu1 %vm2503_vm6, %v1793_v39 }
  0xb7   : > { %v672_v50 = vsel %vm664_vm13, %v2088_v48, %v2083_v43  ;;  %v671_v51 = vsel %vm664_vm13, %v2087_v49, %v2082_v44  ;;  %v2091_v52 = vpop.permute.xlu0 %2090  ;;  %v668_v54 = vsel %vm664_vm13, %v2083_v43, %v2088_v48  ;;  %v667_v58 = vsel %vm664_vm13, %v2082_v44, %v2087_v49  ;;  %1797 = vmatprep.subr.msk.bf16.mxu1 %vm1789_vm2, %v1796_v47  ;;  %v2227_v47 = vld [vmem:[%s3228_s3 + $0x20] ss:$12 sps:$4 sm:$0xff]   ;;  %v2230_v48 = vld [vmem:[%s3228_s3 + $0x18] ss:$12 sps:$4 sm:$0xff]  }
  0xb8   : > { %v2093_v55 = vunpack.i.h.bf16 %v2091_v52  ;;  %v2092_v56 = vunpack.i.l.bf16 %v2091_v52  ;;  %v2096_v57 = vpop.permute.xlu1 %2095  ;;  %v1802_v59 = vpack.c.bf16 %v672_v50, %v671_v51  ;;  %v1805_v12 = vpack.c.bf16 %v668_v54, %v667_v58 }
  0xb9   : > { %v2098_v60 = vunpack.i.h.bf16 %v2096_v57  ;;  %v2097_v61 = vunpack.i.l.bf16 %v2096_v57  ;;  %v646_v43 = vpack.c.bf16 %v2354_v1, %v2351_v0  ;;  %v645_v44 = vpack.c.bf16 %v2380_v9, %v2377_v8  ;;  %v2224_v1 = vld [vmem:[%s3228_s3] ss:$12 sps:$4 sm:$0xff]  }
  0xba   : > { %1800 = vmatpush2.bf16.msk.msra.mxu1 %vm2503_vm6, %v1799_v53  ;;  %vm2742_vm6 = vmpackc.low %vm474_vm9, %vm474_vm9  ;;  %v644_v0 = vpack.c.bf16 %v2364_v4, %v2357_v2  ;;  %vm1193_vm9 = vcmp.lt.s32.totalorder %v2466_v37, 4  ;;  %vm1150_vm2 = vcmp.lt.s32.totalorder %v2466_v37, 60 }
  0xbb   : > { %v666_v62 = vsel %vm664_vm13, %v2093_v55, %v2098_v60  ;;  %v670_v3 = vsel %vm664_vm13, %v2098_v60, %v2093_v55  ;;  %v665_v7 = vsel %vm664_vm13, %v2092_v56, %v2097_v61  ;;  %v669_v63 = vsel %vm664_vm13, %v2097_v61, %v2092_v56  ;;  %v2101_v10 = vpop.permute.xlu0 %2100  ;;  %1803 = vmatprep.subr.msk.bf16.mxu1 %vm2531_vm10, %v1802_v59  ;;  %vm2973_vm13 = vmand %vm1045_vm11, %vm1049_vm8 }
  0xbc   : > { %v2103_v13 = vunpack.i.h.bf16 %v2101_v10  ;;  %v2102_v14 = vunpack.i.l.bf16 %v2101_v10  ;;  %v2106_v15 = vpop.permute.xlu1 %2105  ;;  %v1808_v17 = vpack.c.bf16 %v670_v3, %v669_v63  ;;  %v1811_v20 = vpack.c.bf16 %v666_v62, %v665_v7 }
  0xbd   : > { %v2108_v18 = vunpack.i.h.bf16 %v2106_v15  ;;  %v2107_v19 = vunpack.i.l.bf16 %v2106_v15  ;;  %vm1109_vm8 = vcmp.lt.s32.totalorder %v2466_v37, 64 }
  0xbe   : > { %1806 = vmatpush2.bf16.msk.msra.mxu1 %vm2742_vm6, %v1805_v12 }
  0xbf   : > { %v793_v21 = vsel %vm789_vm14, %v2103_v13, %v2108_v18  ;;  %v797_v22 = vsel %vm789_vm14, %v2108_v18, %v2103_v13  ;;  %v792_v23 = vsel %vm789_vm14, %v2102_v14, %v2107_v19  ;;  %v796_v24 = vsel %vm789_vm14, %v2107_v19, %v2102_v14  ;;  %v2111_v26 = vpop.permute.xlu0 %2110  ;;  %1809 = vmatprep.subr.msk.bf16.mxu1 %vm2531_vm10, %v1808_v17 }
  0xc0   : > { %v1814_v27 = vpack.c.bf16 %v797_v22, %v796_v24  ;;  %v1817_v29 = vpack.c.bf16 %v793_v21, %v792_v23  ;;  %v2113_v30 = vunpack.i.h.bf16 %v2111_v26  ;;  %v2112_v31 = vunpack.i.l.bf16 %v2111_v26  ;;  %v2116_v32 = vpop.permute.xlu1 %2115 }
  0xc1   : > { %v2118_v33 = vunpack.i.h.bf16 %v2116_v32  ;;  %v2117_v34 = vunpack.i.l.bf16 %v2116_v32  ;;  %vm1047_vm10 = vcmp.ge.s32.totalorder %v2472_v41, 4 }
  0xc2   : > { %1815 = vmatprep.subr.msk.bf16.mxu0 %vm1813_vm7, %v1814_v27  ;;  %1812 = vmatpush2.bf16.msk.msra.mxu1 %vm2742_vm6, %v1811_v20  ;;  %vm2941_vm4 = vmpackc.low %vm1047_vm10, %vm1047_vm10 }
  0xc3   : > { %v791_v36 = vsel %vm789_vm14, %v2113_v30, %v2118_v33  ;;  %v795_v39 = vsel %vm789_vm14, %v2118_v33, %v2113_v30  ;;  %v790_v40 = vsel %vm789_vm14, %v2112_v31, %v2117_v34  ;;  %v794_v28 = vsel %vm789_vm14, %v2117_v34, %v2112_v31  ;;  %1818 = vmatpush1.bf16.msk.msra.mxu0 %vm2742_vm6, %v1817_v29  ;;  %vm2981_vm14 = vmand %vm1042_vm12, %vm1048_vm5 }
  0xc4   : > { %v1820_v5 = vpack.c.bf16 %v795_v39, %v794_v28  ;;  %v1823_v6 = vpack.c.bf16 %v791_v36, %v790_v40  ;;  %900 = vmatprep.subr.bf16.mxu1 %v647_v35 }
  0xc6   : > { %1821 = vmatprep.subr.msk.bf16.mxu0 %vm1813_vm7, %v1820_v5  ;;  %901 = vmatpush2.bf16.msra.mxu1 %v646_v43  ;;  %vm1856_vm7 = vmpackc.low %vm2981_vm14, %vm2981_vm14 }
  0xc7   : > { %1824 = vmatpush1.bf16.msk.msra.mxu0 %vm2742_vm6, %v1823_v6  ;;  %902 = vmatprep.subr.bf16.mxu1 %v645_v44  ;;  %vm1913_vm6 = vmpackc.low %vm2973_vm13, %vm2973_vm13 }
  0xc8   : > { %vm3089_vm13 = vmand %vm1042_vm12, %vm1046_vm1 }
  0xc9   : > { %vm1874_vm1 = vmpackc.low %vm3089_vm13, %vm3089_vm13 }
  0xca   : > { %1825 = vmatmul.mubr.msk.bf16.vlgmr.msra.gmra.mxu0 %vm408_vm0, %v2223_v45  ;;  %903 = vmatpush2.bf16.msra.mxu1 %v644_v0  ;;  %vm3130_vm14 = vmand %vm1045_vm11, %vm1047_vm10 }
  0xcb   : > { %967 = vmatprep.mubr.bf16.mxu0 %v2291_v25 }
  0xcc   : > { %v829_v59 = vpop.permute.xlu0 %828 }
  0xcd   : > { %905 = vmatmul.mubr.bf16.vlgmr.msra.gmra.mxu1 %v2224_v1  ;;  %v834_v57 = vpop.permute.xlu1 %833 }
  0xce   : > { %914 = vmatprep.mubr.bf16.mxu1 %v2228_v46 }
  0xd0   : > { %v824_v12 = vpop.permute.xlu0 %823 }
  0xd1   : > { %v819_v62 = vpop.permute.xlu1 %818 }
  0xd2   : > { %1826 = vmatmul.mubr.msk.bf16.gmra.mxu0 %vm408_vm0, %v2227_v47 }
  0xd5   : > { %915 = vmatmul.mubr.bf16.gmra.mxu1 %v2230_v48 }
  0xd6   : > { %1456 = vmatprep.mubr.bf16.mxu1 %v2291_v25 }
  0xdc   : > { %v2812_v49 = vpop.f32.mrf.mxu0 }
  0xde   : > { %v2814_v50 = vpop.f32.mrf.mxu0 }
  0xe0   : > { %v2816_v51 = vpop.f32.mrf.mxu0 }
  0xe2   : > { %v2818_v52 = vpop.f32.mrf.mxu0 }
  0xe4   : > { %v2820_v53 = vpop.f32.mrf.mxu0 }
  0xe6   : > { %v2822_v54 = vpop.f32.mrf.mxu0 }
  0xe8   : > { %v2824_v55 = vpop.f32.mrf.mxu0 }
  0xea   : > { %v2826_v56 = vpop.f32.mrf.mxu0 }
 0x18a   : > { %v959_v58 = vpop.f32.mrf.mxu0 }
 0x18c   : > { %v961_v60 = vpop.f32.mrf.mxu0 }
 0x18d   : > { %v906_v3 = vpop.f32.mrf.mxu1 }
 0x18e   : > { %v963_v61 = vpop.f32.mrf.mxu0  ;;  %v907_v7 = vadd.f32 %v906_v3, %v819_v62 }
 0x18f   : > { %v908_v10 = vpop.f32.mrf.mxu1 }
 0x190   : > { %v965_v63 = vpop.f32.mrf.mxu0  ;;  %v960_v13 = vadd.f32 %v959_v58, %v907_v7  ;;  %v909_v14 = vadd.f32 %v908_v10, %v819_v62 }
 0x191   : > { %v910_v15 = vpop.f32.mrf.mxu1 }
 0x192   : > { %v969_v16 = vpop.f32.mrf.mxu0  ;;  %v1827_v17 = vmul.f32 -1.442695, %v960_v13  ;;  %v962_v18 = vadd.f32 %v961_v60, %v909_v14  ;;  %v911_v19 = vadd.f32 %v910_v15, %v824_v12  ;;  %v391_v13 = vpop.permute.xlu1 %390 }
 0x193   : > { %v912_v11 = vpop.f32.mrf.mxu1 }
 0x194   : > { %2241 = vpow2.f32 %v1827_v17  ;;  %v1828_v20 = vmul.f32 -1.442695, %v962_v18  ;;  %v964_v21 = vadd.f32 %v963_v61, %v911_v19  ;;  %v913_v22 = vadd.f32 %v912_v11, %v824_v12  ;;  %v971_v23 = vpop.f32.mrf.mxu0  ;;  %v396_v12 = vpop.permute.xlu0 %395 }
 0x195   : > { %v916_v24 = vpop.f32.mrf.mxu1 }
 0x196   : > { %2243 = vpow2.f32 %v1828_v20  ;;  %v1829_v26 = vmul.f32 -1.442695, %v964_v21  ;;  %v966_v27 = vadd.f32 %v965_v63, %v913_v22  ;;  %v917_v29 = vadd.f32 %v916_v24, %v829_v59  ;;  %v973_v34 = vpop.f32.mrf.mxu0  ;;  %v381_v11 = vpop.permute.xlu1 %380 }
 0x197   : > { %v918_v30 = vpop.f32.mrf.mxu1 }
 0x198   : > { %2245 = vpow2.f32 %v1829_v26  ;;  %v1830_v31 = vmul.f32 -1.442695, %v966_v27  ;;  %v970_v32 = vadd.f32 %v969_v16, %v917_v29  ;;  %v919_v33 = vadd.f32 %v918_v30, %v829_v59  ;;  %v975_v44 = vpop.f32.mrf.mxu0  ;;  %v386_v18 = vpop.permute.xlu0 %385 }
 0x199   : > { %v920_v35 = vpop.f32.mrf.mxu1  ;;  %v2830_v22 = vadd.f32 %v2816_v51, %v386_v18  ;;  %v2834_v26 = vadd.f32 %v2812_v49, %v381_v11  ;;  %v2837_v27 = vadd.f32 %v2818_v52, %v386_v18 }
 0x19a   : > { %2247 = vpow2.f32 %v1830_v31  ;;  %v1831_v36 = vmul.f32 -1.442695, %v970_v32  ;;  %v972_v39 = vadd.f32 %v971_v23, %v919_v33  ;;  %v921_v40 = vadd.f32 %v920_v35, %v834_v57 }
 0x19b   : > { %v922_v28 = vpop.f32.mrf.mxu1  ;;  %v2860_v35 = vadd.f32 %v2820_v53, %v391_v13 }
 0x19c   : > { %2249 = vpow2.f32 %v1831_v36  ;;  %v1832_v5 = vmul.f32 -1.442695, %v972_v39  ;;  %v974_v6 = vadd.f32 %v973_v34, %v921_v40  ;;  %v923_v43 = vadd.f32 %v922_v28, %v834_v57  ;;  %v2274_v36 = vld [vmem:[%s2348_s26 + $0x28] sm:$0xff]  ;;  %v2275_v40 = vld [vmem:[%s2348_s26 + $0x30] sm:$0xff] }
 0x19e   : > { %2251 = vpow2.f32 %v1832_v5  ;;  %v1833_v45 = vmul.f32 -1.442695, %v974_v6  ;;  %v976_v0 = vadd.f32 %v975_v44, %v923_v43  ;;  %v2870_v43 = vadd.f32 %v2822_v54, %v391_v13 }
 0x19f   : > { %v2873_v44 = vadd.f32 %v2826_v56, %v396_v12 }
 0x1a0   : > { %2253 = vpow2.f32 %v1833_v45  ;;  %v1834_v1 = vmul.f32 -1.442695, %v976_v0  ;;  %v2276_v45 = vld [vmem:[%s2348_s26 + $0x38] sm:$0xff] }
 0x1a1   : > { %v2242_v46 = vpop.eup %2241 }
 0x1a2   : > { %v1002_v47 = vadd.f32 1.0, %v2242_v46  ;;  %2255 = vpow2.f32 %v1834_v1 }
 0x1a3   : > { %v2244_v48 = vpop.eup %2243 }
 0x1a4   : > { %v1003_v58 = vadd.f32 1.0, %v2244_v48  ;;  %2257 = vrcp.f32 %v1002_v47 }
 0x1a5   : > { %v2246_v59 = vpop.eup %2245 }
 0x1a6   : > { %v1004_v60 = vadd.f32 1.0, %v2246_v59  ;;  %2259 = vrcp.f32 %v1003_v58 }
 0x1a7   : > { %v2248_v61 = vpop.eup %2247 }
 0x1a8   : > { %2261 = vrcp.f32 %v1004_v60  ;;  %v1005_v62 = vadd.f32 1.0, %v2248_v61  ;;  %v1725_v60 = vld [vmem:[%s3229_s4 + $0x50] sm:$0xff]  ;;  %v1726_v61 = vld [vmem:[%s3229_s4 + $0x58] sm:$0xff] }
 0x1a9   : > { %v2250_v3 = vpop.eup %2249 }
 0x1aa   : > { %2263 = vrcp.f32 %v1005_v62  ;;  %v1006_v57 = vadd.f32 1.0, %v2250_v3  ;;  %v1723_v62 = vld [vmem:[%s3229_s4 + $0x40] sm:$0xff]  ;;  %v1724_v3 = vld [vmem:[%s3229_s4 + $0x48] sm:$0xff] }
 0x1ab   : > { %v2252_v7 = vpop.eup %2251 }
 0x1ac   : > { %2265 = vrcp.f32 %v1006_v57  ;;  %v1007_v63 = vadd.f32 1.0, %v2252_v7  ;;  %v1727_v57 = vld [vmem:[%s3229_s4 + $0x60] sm:$0xff]  ;;  %v1728_v7 = vld [vmem:[%s3229_s4 + $0x68] sm:$0xff] }
 0x1ad   : > { %v2254_v10 = vpop.eup %2253 }
 0x1ae   : > { %2267 = vrcp.f32 %v1007_v63  ;;  %v1008_v14 = vadd.f32 1.0, %v2254_v10  ;;  %v1729_v63 = vld [vmem:[%s3229_s4 + $0x70] sm:$0xff]  ;;  %v1730_v10 = vld [vmem:[%s3229_s4 + $0x78] sm:$0xff] }
 0x1af   : > { %v2256_v15 = vpop.eup %2255 }
 0x1b0   : > { %2269 = vrcp.f32 %v1008_v14  ;;  %v1009_v16 = vadd.f32 1.0, %v2256_v15 }
 0x1b1   : > { %v2258_v17 = vpop.eup %2257 }
 0x1b2   : > { %2271 = vrcp.f32 %v1009_v16  ;;  %v1026_v21 = vmul.f32 %v2258_v17, %v2357_v2 }
 0x1b3   : > { %v2260_v19 = vpop.eup %2259 }
 0x1b4   : > { %v1027_v29 = vmul.f32 %v2260_v19, %v2377_v8  ;;  %v2845_v31 = vadd.f32 %v1026_v21, %v2834_v26 }
 0x1b5   : > { %v2262_v20 = vpop.eup %2261 }
 0x1b6   : > { %v1028_v23 = vmul.f32 %v2262_v20, %v2364_v4  ;;  %v2848_v4 = vadd.f32 %v2814_v50, %v381_v11  ;;  %v2863_v50 = vadd.f32 %v2824_v55, %v396_v12  ;;  %v2234_v12 = vld [vmem:[%s3228_s3 + $0x34] ss:$12 sps:$4 sm:$0xff]  }
 0x1b7   : > { %v2264_v24 = vpop.eup %2263  ;;  %1403 = vmatprep.mubr.bf16.mxu0 %v2234_v12 }
 0x1b8   : > { %v1029_v30 = vmul.f32 %v2264_v24, %v2380_v9  ;;  %v2842_v2 = vadd.f32 %v1028_v23, %v2830_v22  ;;  %v2273_v9 = vld [vmem:[%s2348_s26 + $0x20] sm:$0xff]  ;;  %v2857_v33 = vadd.f32 %v1027_v29, %v2848_v4  ;;  %s2294_s26 = smov 4  }
 0x1b9   : > { %v2266_v51 = vpop.eup %2265 }
 0x1ba   : > { %v2851_v49 = vadd.f32 %v1029_v30, %v2837_v27  ;;  %v1218_v8 = vpack.c.bf16 %v2842_v2, %v2845_v31  ;;  %v1030_v32 = vmul.f32 %v2273_v9, %v2266_v51  ;;  %v2126_v48 = vpack.i.bf16 %v2842_v2, %v2845_v31 }
 0x1bb   : > { %v2268_v52 = vpop.eup %2267 }
 0x1bc   : > { %v1031_v39 = vmul.f32 %v2274_v36, %v2268_v52  ;;  %v1219_v5 = vpack.c.bf16 %v2851_v49, %v2857_v33  ;;  %v2877_v0 = vadd.f32 %v1030_v32, %v2860_v35  ;;  %v2136_v59 = vpack.i.bf16 %v2851_v49, %v2857_v33  ;;  %v2238_v49 = vld [vmem:[%s3228_s3 + $0x48] ss:$12 sps:$4 sm:$0xff]  }
 0x1bd   : > { %v2270_v34 = vpop.eup %2269 }
 0x1be   : > { %v1032_v28 = vmul.f32 %v2275_v40, %v2270_v34  ;;  %v2885_v46 = vadd.f32 %v1031_v39, %v2870_v43 }
 0x1bf   : > { %v2272_v6 = vpop.eup %2271 }
 0x1c0   : > { %v1033_v53 = vmul.f32 %v2276_v45, %v2272_v6  ;;  %v2880_v55 = vadd.f32 %v1032_v28, %v2863_v50 }
 0x1c2   : > { %v2121_v1 = vpack.i.bf16 %v2880_v55, %v2877_v0  ;;  %v2888_v54 = vadd.f32 %v1033_v53, %v2873_v44  ;;  %v1220_v56 = vpack.c.bf16 %v2880_v55, %v2877_v0 }
 0x1c4   : > { %2122 = vrot.lane.b32.xlu1 %v2121_v1, %s2294_s26  ;;  %v2131_v47 = vpack.i.bf16 %v2888_v54, %v2885_v46  ;;  %v1221_v58 = vpack.c.bf16 %v2888_v54, %v2885_v46  ;;  %v2236_v46 = vld [vmem:[%s3228_s3 + $0x4c] ss:$12 sps:$4 sm:$0xff]  }
 0x1c6   : > { %2132 = vrot.lane.b32.xlu0 %v2131_v47, %s2294_s26 }
 0x1c8   : > { %2127 = vrot.lane.b32.xlu1 %v2126_v48, %s2294_s26 }
 0x1ca   : > { %2137 = vrot.lane.b32.xlu0 %v2136_v59, %s2294_s26 }
 0x1cc   : > { %2142 = vrot.lane.b32.xlu1 %v2121_v1, %s2295_s28 }
 0x1ce   : > { %2152 = vrot.lane.b32.xlu0 %v2131_v47, %s2295_s28 }
 0x1d0   : > { %2147 = vrot.lane.b32.xlu1 %v2126_v48, %s2295_s28 }
 0x1d2   : > { %2157 = vrot.lane.b32.xlu0 %v2136_v59, %s2295_s28 }
 0x1d4   : > { %2162 = vrot.lane.b32.xlu1 %v2121_v1, %s2296_s29 }
 0x1d6   : > { %2172 = vrot.lane.b32.xlu0 %v2131_v47, %s2296_s29 }
 0x1d8   : > { %2167 = vrot.lane.b32.xlu1 %v2126_v48, %s2296_s29 }
 0x1da   : > { %2177 = vrot.lane.b32.xlu0 %v2136_v59, %s2296_s29 }
 0x1dc   : > { %2182 = vrot.lane.b32.xlu1 %v2121_v1, %s2297_s30 }
 0x1de   : > { %2192 = vrot.lane.b32.xlu0 %v2131_v47, %s2297_s30 }
 0x1e0   : > { %2187 = vrot.lane.b32.xlu1 %v2126_v48, %s2297_s30 }
 0x1e2   : > { %2197 = vrot.lane.b32.xlu0 %v2136_v59, %s2297_s30 }
 0x1e4   : > { %2202 = vrot.lane.b32.xlu1 %v2121_v1, %s2298_s7 }
 0x1e6   : > { %2212 = vrot.lane.b32.xlu0 %v2131_v47, %s2298_s7 }
 0x1e8   : > { %2207 = vrot.lane.b32.xlu1 %v2126_v48, %s2298_s7 }
 0x1ea   : > { %2217 = vrot.lane.b32.xlu0 %v2136_v59, %s2298_s7 }
 0x1ec   : > { %1327 = vperm.xlu1 %2120, %v1725_v60  }
 0x1ee   : > { %1332 = vperm.xlu0 %2119, %v1726_v61  }
 0x1f0   : > { %1317 = vperm.xlu1 %2120, %v1723_v62  }
 0x1f2   : > { %1322 = vperm.xlu0 %2119, %v1724_v3  }
 0x1f4   : > { %1491 = vperm.xlu1 %2120, %v1727_v57  }
 0x1f6   : > { %1496 = vperm.xlu0 %2119, %v1728_v7  }
 0x1f8   : > { %1501 = vperm.xlu1 %2120, %v1729_v63  }
 0x1fa   : > { %1506 = vperm.xlu0 %2119, %v1730_v10  }
 0x236   : > { %v2123_v13 = vpop.permute.xlu1 %2122 }
 0x237   : > { %v2125_v15 = vunpack.i.h.bf16 %v2123_v13  ;;  %v2124_v16 = vunpack.i.l.bf16 %v2123_v13 }
 0x238   : > { %v2133_v14 = vpop.permute.xlu0 %2132 }
 0x239   : > { %v2135_v17 = vunpack.i.h.bf16 %v2133_v14  ;;  %v2134_v18 = vunpack.i.l.bf16 %v2133_v14 }
 0x23a   : > { %v2128_v19 = vpop.permute.xlu1 %2127 }
 0x23b   : > { %v1196_v11 = vsel %vm1193_vm9, %v2124_v16, %v2134_v18  ;;  %v1197_v20 = vsel %vm1193_vm9, %v2125_v15, %v2135_v17  ;;  %v1200_v21 = vsel %vm1193_vm9, %v2134_v18, %v2124_v16  ;;  %v1201_v23 = vsel %vm1193_vm9, %v2135_v17, %v2125_v15 }
 0x23c   : > { %v1842_v29 = vpack.c.bf16 %v1197_v20, %v1196_v11  ;;  %v1845_v30 = vpack.c.bf16 %v1201_v23, %v1200_v21  ;;  %v2138_v51 = vpop.permute.xlu0 %2137  ;;  %v2130_v9 = vunpack.i.h.bf16 %v2128_v19  ;;  %v2129_v32 = vunpack.i.l.bf16 %v2128_v19 }
 0x23d   : > { %v2140_v34 = vunpack.i.h.bf16 %v2138_v51  ;;  %v2139_v36 = vunpack.i.l.bf16 %v2138_v51 }
 0x23e   : > { %1843 = vmatprep.subr.msk.bf16.mxu0 %vm2941_vm4, %v1842_v29  ;;  %v2143_v39 = vpop.permute.xlu1 %2142 }
 0x23f   : > { %v1194_v40 = vsel %vm1193_vm9, %v2129_v32, %v2139_v36  ;;  %v1195_v28 = vsel %vm1193_vm9, %v2130_v9, %v2140_v34  ;;  %v1198_v6 = vsel %vm1193_vm9, %v2139_v36, %v2129_v32  ;;  %v1199_v45 = vsel %vm1193_vm9, %v2140_v34, %v2130_v9  ;;  %1846 = vmatpush1.bf16.msk.msra.mxu0 %vm2948_vm3, %v1845_v30  ;;  %vm3013_vm9 = vmpackc.low %vm1048_vm5, %vm1048_vm5 }
 0x240   : > { %v1848_v53 = vpack.c.bf16 %v1195_v28, %v1194_v40  ;;  %v1851_v1 = vpack.c.bf16 %v1199_v45, %v1198_v6  ;;  %v2153_v47 = vpop.permute.xlu0 %2152  ;;  %v2145_v59 = vunpack.i.h.bf16 %v2143_v39  ;;  %v2144_v60 = vunpack.i.l.bf16 %v2143_v39  ;;  %vm3068_vm5 = vmpackc.low %vm1042_vm12, %vm1042_vm12 }
 0x241   : > { %v2155_v61 = vunpack.i.h.bf16 %v2153_v47  ;;  %v2154_v62 = vunpack.i.l.bf16 %v2153_v47  ;;  %vm1883_vm12 = vmpackc.low %vm1045_vm11, %vm1045_vm11 }
 0x242   : > { %v2148_v57 = vpop.permute.xlu1 %2147  ;;  %1849 = vmatprep.subr.msk.bf16.mxu0 %vm2941_vm4, %v1848_v53 }
 0x243   : > { %v1153_v63 = vsel %vm1150_vm2, %v2144_v60, %v2154_v62  ;;  %v1154_v10 = vsel %vm1150_vm2, %v2145_v59, %v2155_v61  ;;  %v1157_v12 = vsel %vm1150_vm2, %v2154_v62, %v2144_v60  ;;  %v1158_v13 = vsel %vm1150_vm2, %v2155_v61, %v2145_v59  ;;  %1852 = vmatpush1.bf16.msk.msra.mxu0 %vm2948_vm3, %v1851_v1  ;;  %v2231_v1 = vld [vmem:[%s3228_s3 + $0x38] ss:$12 sps:$4 sm:$0xff]  }
 0x244   : > { %v1854_v14 = vpack.c.bf16 %v1154_v10, %v1153_v63  ;;  %v1857_v15 = vpack.c.bf16 %v1158_v13, %v1157_v12  ;;  %v2158_v16 = vpop.permute.xlu0 %2157  ;;  %v2150_v17 = vunpack.i.h.bf16 %v2148_v57  ;;  %v2149_v18 = vunpack.i.l.bf16 %v2148_v57 }
 0x245   : > { %v2160_v19 = vunpack.i.h.bf16 %v2158_v16  ;;  %v2159_v11 = vunpack.i.l.bf16 %v2158_v16 }
 0x246   : > { %v2163_v21 = vpop.permute.xlu1 %2162  ;;  %1855 = vmatprep.subr.msk.bf16.mxu0 %vm2990_vm15, %v1854_v14  ;;  %1915 = vmatprep.subr.msk.bf16.mxu1 %vm1913_vm6, %v1857_v15 }
 0x247   : > { %v1151_v23 = vsel %vm1150_vm2, %v2149_v18, %v2159_v11  ;;  %v1152_v29 = vsel %vm1150_vm2, %v2150_v17, %v2160_v19  ;;  %v1155_v30 = vsel %vm1150_vm2, %v2159_v11, %v2149_v18  ;;  %v1156_v51 = vsel %vm1150_vm2, %v2160_v19, %v2150_v17  ;;  %1858 = vmatpush1.bf16.msk.msra.mxu0 %vm1856_vm7, %v1857_v15 }
 0x248   : > { %v1860_v9 = vpack.c.bf16 %v1152_v29, %v1151_v23  ;;  %v1863_v32 = vpack.c.bf16 %v1156_v51, %v1155_v30  ;;  %1918 = vmatpush1.bf16.msk.msra.mxu1 %vm3013_vm9, %v1854_v14  ;;  %v2173_v34 = vpop.permute.xlu0 %2172  ;;  %v2165_v36 = vunpack.i.h.bf16 %v2163_v21  ;;  %v2164_v39 = vunpack.i.l.bf16 %v2163_v21 }
 0x249   : > { %v2175_v40 = vunpack.i.h.bf16 %v2173_v34  ;;  %v2174_v28 = vunpack.i.l.bf16 %v2173_v34  ;;  %vm1066_vm2 = vcmp.lt.s32.totalorder %v2466_v37, 68 }
 0x24a   : > { %v2168_v6 = vpop.permute.xlu1 %2167  ;;  %1861 = vmatprep.subr.msk.bf16.mxu0 %vm2990_vm15, %v1860_v9  ;;  %1921 = vmatprep.subr.msk.bf16.mxu1 %vm1913_vm6, %v1863_v32  ;;  %vm1238_vm6 = vcmp.lt.s32.totalorder %v2466_v37, 124  ;;  %v2232_v37 = vld [vmem:[%s3228_s3 + $0x30] ss:$12 sps:$4 sm:$0xff]  }
 0x24b   : > { %v1116_v45 = vsel %vm1109_vm8, %v2174_v28, %v2164_v39  ;;  %v1117_v53 = vsel %vm1109_vm8, %v2175_v40, %v2165_v36  ;;  %1864 = vmatpush1.bf16.msk.msra.mxu0 %vm1856_vm7, %v1863_v32  ;;  %v2170_v48 = vunpack.i.h.bf16 %v2168_v6  ;;  %v1112_v60 = vsel %vm1109_vm8, %v2164_v39, %v2174_v28 }
 0x24c   : > { %v1866_v47 = vpack.c.bf16 %v1117_v53, %v1116_v45  ;;  %1924 = vmatpush1.bf16.msk.msra.mxu1 %vm3013_vm9, %v1860_v9  ;;  %v2178_v59 = vpop.permute.xlu0 %2177  ;;  %v1113_v61 = vsel %vm1109_vm8, %v2165_v36, %v2175_v40  ;;  %v2169_v62 = vunpack.i.l.bf16 %v2168_v6 }
 0x24d   : > { %v2180_v3 = vunpack.i.h.bf16 %v2178_v59  ;;  %v2179_v57 = vunpack.i.l.bf16 %v2178_v59  ;;  %v1133_v63 = vpack.c.bf16 %v1113_v61, %v1112_v60 }
 0x24e   : > { %v2183_v12 = vpop.permute.xlu1 %2182 }
 0x24f   : > { %v1114_v13 = vsel %vm1109_vm8, %v2179_v57, %v2169_v62  ;;  %v1115_v14 = vsel %vm1109_vm8, %v2180_v3, %v2170_v48  ;;  %1379 = vmatprep.subr.bf16.mxu0 %v1133_v63  ;;  %1925 = vmatmul.mubr.msk.bf16.vlgmr.msra.gmra.mxu1 %vm408_vm0, %v2231_v1  ;;  %v2185_v16 = vunpack.i.h.bf16 %v2183_v12  ;;  %v1110_v18 = vsel %vm1109_vm8, %v2169_v62, %v2179_v57 }
 0x250   : > { %v1869_v15 = vpack.c.bf16 %v1115_v14, %v1114_v13  ;;  %1867 = vmatpush1.bf16.msk.msra.mxu0 %vm3068_vm5, %v1866_v47  ;;  %v2193_v17 = vpop.permute.xlu0 %2192  ;;  %v1111_v19 = vsel %vm1109_vm8, %v2170_v48, %v2180_v3  ;;  %1466 = vmatprep.mubr.bf16.mxu1 %v2291_v25  ;;  %v2184_v11 = vunpack.i.l.bf16 %v2183_v12 }
 0x251   : > { %v2195_v21 = vunpack.i.h.bf16 %v2193_v17  ;;  %v2194_v23 = vunpack.i.l.bf16 %v2193_v17  ;;  %v1131_v29 = vpack.c.bf16 %v1111_v19, %v1110_v18 }
 0x252   : > { %v2188_v30 = vpop.permute.xlu1 %2187 }
 0x253   : > { %v1069_v9 = vsel %vm1066_vm2, %v2184_v11, %v2194_v23  ;;  %v1070_v32 = vsel %vm1066_vm2, %v2185_v16, %v2195_v21  ;;  %v1073_v34 = vsel %vm1066_vm2, %v2194_v23, %v2184_v11  ;;  %v1074_v36 = vsel %vm1066_vm2, %v2195_v21, %v2185_v16  ;;  %1381 = vmatprep.subr.bf16.mxu0 %v1131_v29 }
 0x254   : > { %v1872_v39 = vpack.c.bf16 %v1070_v32, %v1069_v9  ;;  %v1875_v40 = vpack.c.bf16 %v1074_v36, %v1073_v34  ;;  %1870 = vmatpush1.bf16.msk.msra.mxu0 %vm3068_vm5, %v1869_v15  ;;  %v2198_v28 = vpop.permute.xlu0 %2197  ;;  %v2190_v6 = vunpack.i.h.bf16 %v2188_v30  ;;  %v2189_v45 = vunpack.i.l.bf16 %v2188_v30 }
 0x255   : > { %v2200_v53 = vunpack.i.h.bf16 %v2198_v28  ;;  %v2199_v1 = vunpack.i.l.bf16 %v2198_v28 }
 0x256   : > { %1873 = vmatprep.subr.msk.bf16.mxu0 %vm2941_vm4, %v1872_v39  ;;  %v2203_v12 = vpop.permute.xlu1 %2202 }
 0x257   : > { %v1067_v48 = vsel %vm1066_vm2, %v2189_v45, %v2199_v1  ;;  %v1068_v59 = vsel %vm1066_vm2, %v2190_v6, %v2200_v53  ;;  %v1071_v60 = vsel %vm1066_vm2, %v2199_v1, %v2189_v45  ;;  %v1072_v61 = vsel %vm1066_vm2, %v2200_v53, %v2190_v6  ;;  %1926 = vmatmul.mubr.msk.bf16.gmra.mxu1 %vm408_vm0, %v2235_v42 }
 0x258   : > { %v1878_v62 = vpack.c.bf16 %v1068_v59, %v1067_v48  ;;  %v1881_v3 = vpack.c.bf16 %v1072_v61, %v1071_v60  ;;  %1876 = vmatpush1.bf16.msk.msra.mxu0 %vm1874_vm1, %v1875_v40  ;;  %1557 = vmatprep.mubr.bf16.mxu1 %v2291_v25  ;;  %v2213_v57 = vpop.permute.xlu0 %2212  ;;  %v2205_v41 = vunpack.i.h.bf16 %v2203_v12  ;;  %v2204_v38 = vunpack.i.l.bf16 %v2203_v12 }
 0x259   : > { %v2215_v24 = vunpack.i.h.bf16 %v2213_v57  ;;  %v2214_v13 = vunpack.i.l.bf16 %v2213_v57 }
 0x25a   : > { %1879 = vmatprep.subr.msk.bf16.mxu0 %vm2941_vm4, %v1878_v62  ;;  %vm1889_vm4 = vmpackc.low %vm3130_vm14, %vm3130_vm14  ;;  %v2208_v14 = vpop.permute.xlu1 %2207 }
 0x25b   : > { %v1245_v16 = vsel %vm1238_vm6, %v2214_v13, %v2204_v38  ;;  %v2210_v18 = vunpack.i.h.bf16 %v2208_v14  ;;  %v2209_v19 = vunpack.i.l.bf16 %v2208_v14  ;;  %v1241_v11 = vsel %vm1238_vm6, %v2204_v38, %v2214_v13 }
 0x25c   : > { %1882 = vmatpush1.bf16.msk.msra.mxu0 %vm1874_vm1, %v1881_v3  ;;  %v1242_v21 = vsel %vm1238_vm6, %v2205_v41, %v2215_v24 }
 0x25d   : > { %1885 = vmatprep.subr.msk.bf16.mxu0 %vm1883_vm12, %v1866_v47  ;;  %v2218_v47 = vpop.permute.xlu0 %2217  ;;  %v1905_v51 = vpack.c.bf16 %v1242_v21, %v1241_v11 }
 0x25e   : > { %v2219_v17 = vunpack.i.l.bf16 %v2218_v47 }
 0x260   : > { %1388 = vmatpush2.bf16.msra.mxu0 %v1133_v63  ;;  %v1246_v63 = vsel %vm1238_vm6, %v2215_v24, %v2205_v41  ;;  %v1239_v9 = vsel %vm1238_vm6, %v2209_v19, %v2219_v17 }
 0x261   : > { %1888 = vmatprep.subr.msk.bf16.mxu0 %vm1883_vm12, %v1869_v15  ;;  %v2220_v15 = vunpack.i.h.bf16 %v2218_v47  ;;  %v1902_v23 = vpack.c.bf16 %v1246_v63, %v1245_v16 }
 0x263   : > { %v1244_v30 = vsel %vm1238_vm6, %v2220_v15, %v2210_v18  ;;  %v1240_v32 = vsel %vm1238_vm6, %v2210_v18, %v2220_v15 }
 0x264   : > { %1390 = vmatpush2.bf16.msra.mxu0 %v1131_v29  ;;  %v1243_v29 = vsel %vm1238_vm6, %v2219_v17, %v2209_v19  ;;  %v1911_v36 = vpack.c.bf16 %v1240_v32, %v1239_v9 }
 0x265   : > { %1891 = vmatprep.subr.msk.bf16.mxu0 %vm1889_vm4, %v1875_v40  ;;  %v1908_v34 = vpack.c.bf16 %v1244_v30, %v1243_v29 }
 0x267   : > { %v1328_v0 = vpop.permute.xlu1 %1327 }
 0x268   : > { %1894 = vmatpush2.bf16.msk.msra.mxu0 %vm2948_vm3, %v1872_v39 }
 0x269   : > { %1897 = vmatprep.subr.msk.bf16.mxu0 %vm1889_vm4, %v1881_v3  ;;  %v1333_v54 = vpop.permute.xlu0 %1332 }
 0x26c   : > { %1900 = vmatpush2.bf16.msk.msra.mxu0 %vm2948_vm3, %v1878_v62 }
 0x26d   : > { %1903 = vmatprep.subr.msk.bf16.mxu0 %vm2990_vm15, %v1902_v23  ;;  %v1323_v52 = vpop.permute.xlu0 %1322 }
 0x270   : > { %1906 = vmatpush2.bf16.msk.msra.mxu0 %vm3013_vm9, %v1905_v51 }
 0x271   : > { %1909 = vmatprep.subr.msk.bf16.mxu0 %vm2990_vm15, %v1908_v34  ;;  %v1497_v51 = vpop.permute.xlu0 %1496 }
 0x274   : > { %1912 = vmatpush2.bf16.msk.msra.mxu0 %vm3013_vm9, %v1911_v36 }
 0x275   : > { %1399 = vmatprep.subr.bf16.mxu0 %v1221_v58 }
 0x278   : > { %1400 = vmatpush2.bf16.msra.mxu0 %v1220_v56  ;;  %v1318_v56 = vpop.permute.xlu1 %1317 }
 0x279   : > { %1401 = vmatprep.subr.bf16.mxu0 %v1219_v5 }
 0x27c   : > { %1402 = vmatpush2.bf16.msra.mxu0 %v1218_v8 }
 0x27f   : > { %1404 = vmatmul.mubr.bf16.vlgmr.msra.gmra.mxu0 %v2232_v37 }
 0x280   : > { %1413 = vmatprep.mubr.bf16.mxu0 %v2236_v46 }
 0x287   : > { %1414 = vmatmul.mubr.bf16.gmra.mxu0 %v2238_v49 }
 0x30f   : > { %v1458_v33 = vpop.f32.mrf.mxu1 }
 0x311   : > { %v1460_v5 = vpop.f32.mrf.mxu1 }
 0x313   : > { %v1462_v55 = vpop.f32.mrf.mxu1 }
 0x315   : > { %v1464_v31 = vpop.f32.mrf.mxu1 }
 0x317   : > { %v1468_v39 = vpop.f32.mrf.mxu1 }
 0x319   : > { %v1470_v59 = vpop.f32.mrf.mxu1 }
 0x33f   : > { %v1405_v2 = vpop.f32.mrf.mxu0 }
 0x340   : > { %v1406_v8 = vadd.f32 %v1405_v2, %v1318_v56 }
 0x341   : > { %v1407_v58 = vpop.f32.mrf.mxu0 }
 0x342   : > { %v1459_v7 = vadd.f32 %v1458_v33, %v1406_v8  ;;  %v1408_v20 = vadd.f32 %v1407_v58, %v1318_v56 }
 0x343   : > { %v1409_v42 = vpop.f32.mrf.mxu0 }
 0x344   : > { %v1477_v40 = vadd.f32 %v1459_v7, %v2834_v26  ;;  %v1461_v28 = vadd.f32 %v1460_v5, %v1408_v20  ;;  %v1410_v6 = vadd.f32 %v1409_v42, %v1323_v52  ;;  %v1507_v5 = vpop.permute.xlu0 %1506 }
 0x345   : > { %v1411_v45 = vpop.f32.mrf.mxu0 }
 0x346   : > { %1578 = vst [vmem:[%s3191_s16] sm:$0xff] %v1477_v40  ;;  %v1478_v53 = vadd.f32 %v1461_v28, %v2848_v4  ;;  %v1463_v1 = vadd.f32 %v1462_v55, %v1410_v6  ;;  %v1412_v48 = vadd.f32 %v1411_v45, %v1323_v52  ;;  %v1472_v4 = vpop.f32.mrf.mxu1 }
 0x347   : > { %v1415_v60 = vpop.f32.mrf.mxu0 }
 0x348   : > { %1579 = vst [vmem:[%s3191_s16 + $0x8] sm:$0xff] %v1478_v53  ;;  %v1479_v61 = vadd.f32 %v1463_v1, %v2830_v22  ;;  %v1465_v62 = vadd.f32 %v1464_v31, %v1412_v48  ;;  %v1416_v3 = vadd.f32 %v1415_v60, %v1328_v0  ;;  %v1474_v63 = vpop.f32.mrf.mxu1 }
 0x349   : > { %v1417_v57 = vpop.f32.mrf.mxu0 }
 0x34a   : > { %1580 = vst [vmem:[%s3191_s16 + $0x10] sm:$0xff] %v1479_v61  ;;  %v1480_v26 = vadd.f32 %v1465_v62, %v2837_v27  ;;  %v1469_v10 = vadd.f32 %v1468_v39, %v1416_v3  ;;  %v1418_v12 = vadd.f32 %v1417_v57, %v1328_v0  ;;  %v1485_v11 = vpack.c.bf16 %v1479_v61, %v1477_v40 }
 0x34b   : > { %v1419_v24 = vpop.f32.mrf.mxu0 }
 0x34c   : > { %1581 = vst [vmem:[%s3191_s16 + $0x18] sm:$0xff] %v1480_v26  ;;  %v1481_v13 = vadd.f32 %v1469_v10, %v2860_v35  ;;  %v1471_v47 = vadd.f32 %v1470_v59, %v1418_v12  ;;  %v1420_v41 = vadd.f32 %v1419_v24, %v1333_v54  ;;  %v1486_v19 = vpack.c.bf16 %v1480_v26, %v1478_v53 }
 0x34d   : > { %v1421_v38 = vpop.f32.mrf.mxu0 }
 0x34e   : > { %1582 = vst [vmem:[%s3191_s16 + $0x20] sm:$0xff] %v1481_v13  ;;  %v1482_v22 = vadd.f32 %v1471_v47, %v2870_v43  ;;  %v1473_v14 = vadd.f32 %v1472_v4, %v1420_v41  ;;  %v1422_v16 = vadd.f32 %v1421_v38, %v1333_v54  ;;  %v2239_v43 = vld [vmem:[%s3227_s2 + $0x10] sm:$0xff]  }
 0x350   : > { %1583 = vst [vmem:[%s3191_s16 + $0x28] sm:$0xff] %v1482_v22  ;;  %v1483_v27 = vadd.f32 %v1473_v14, %v2863_v50  ;;  %v1475_v15 = vadd.f32 %v1474_v63, %v1422_v16  ;;  %v2240_v50 = vld [vmem:[%s3227_s2 + $0x18] sm:$0xff]  }
 0x352   : > { %1584 = vst [vmem:[%s3191_s16 + $0x30] sm:$0xff] %v1483_v27  ;;  %v1484_v17 = vadd.f32 %v1475_v15, %v2873_v44  ;;  %v1487_v35 = vpack.c.bf16 %v1483_v27, %v1481_v13  ;;  %v1492_v44 = vpop.permute.xlu1 %1491 }
 0x354   : > { %1585 = vst [vmem:[%s3191_s16 + $0x38] sm:$0xff] %v1484_v17  ;;  %v1488_v18 = vpack.c.bf16 %v1484_v17, %v1482_v22 }
 0x356   : > { %1537 = vmatprep.subr.bf16.mxu1 %v1488_v18  ;;  %v1502_v36 = vpop.permute.xlu1 %1501 }
 0x357   : > { %1538 = vmatpush1.bf16.msra.mxu1 %v1487_v35 }
 0x358   : > { %1539 = vmatprep.subr.bf16.mxu1 %v1486_v19 }
 0x35b   : > { %1540 = vmatpush1.bf16.msra.mxu1 %v1485_v11 }
 0x35e   : > { %1929 = vmatmul.mubr.msk.bf16.vlgmr.msra.gmra.mxu1 %vm408_vm0, %v2239_v43 }
 0x35f   : > { %1567 = vmatprep.mubr.bf16.mxu1 %v2291_v25 }
 0x366   : > { %1930 = vmatmul.mubr.msk.bf16.gmra.mxu1 %vm408_vm0, %v2240_v50 }
 0x41e   : > { %v1559_v21 = vpop.f32.mrf.mxu1 }
 0x41f   : > { %v1560_v23 = vadd.f32 %v1559_v21, %v1492_v44 }
 0x420   : > { %v1561_v29 = vpop.f32.mrf.mxu1 }
 0x421   : > { %1586 = vst [vmem:[%s284_s25] sm:$0xff] %v1560_v23  ;;  %v1562_v30 = vadd.f32 %v1561_v29, %v1492_v44 }
 0x422   : > { %v1563_v9 = vpop.f32.mrf.mxu1 }
 0x423   : > { %1587 = vst [vmem:[%s284_s25 + $0x8] sm:$0xff] %v1562_v30  ;;  %v1564_v25 = vadd.f32 %v1563_v9, %v1497_v51 }
 0x424   : > { %v1565_v32 = vpop.f32.mrf.mxu1 }
 0x425   : > { %1588 = vst [vmem:[%s284_s25 + $0x10] sm:$0xff] %v1564_v25  ;;  %v1566_v34 = vadd.f32 %v1565_v32, %v1497_v51 }
 0x426   : > { %v1569_v37 = vpop.f32.mrf.mxu1 }
 0x427   : > { %1589 = vst [vmem:[%s284_s25 + $0x18] sm:$0xff] %v1566_v34  ;;  %v1570_v46 = vadd.f32 %v1569_v37, %v1502_v36 }
 0x428   : > { %v1571_v49 = vpop.f32.mrf.mxu1 }
 0x429   : > { %1590 = vst [vmem:[%s284_s25 + $0x20] sm:$0xff] %v1570_v46  ;;  %v1572_v33 = vadd.f32 %v1571_v49, %v1502_v36 }
 0x42a   : > { %v1573_v0 = vpop.f32.mrf.mxu1 }
 0x42b   : > { %1591 = vst [vmem:[%s284_s25 + $0x28] sm:$0xff] %v1572_v33  ;;  %v1574_v55 = vadd.f32 %v1573_v0, %v1507_v5 }
 0x42c   : > { %v1575_v54 = vpop.f32.mrf.mxu1 }
 0x42d   : > { %1592 = vst [vmem:[%s284_s25 + $0x30] sm:$0xff] %v1574_v55  ;;  %v1576_v56 = vadd.f32 %v1575_v54, %v1507_v5 }
 0x42f   : > { %1593 = vst [vmem:[%s284_s25 + $0x38] sm:$0xff] %v1576_v56 }
 0x430 PF: > { %s17_s21 = sadd.s32 1, %s2283_s21  }
 0x431   : > { %p14_p4 = scmp.ge.s32.totalorder %s17_s21, 4  }
 0x433   :  { %16 = sbr.rel (!%p14_p4) target bundleno = 1 (0x1), region = 90 }

</bundles_post_ra>
